<compile_context>
chip_gen: v5e
topology: v5e:2x2
jax: 0.10.0
libtpu: 0.0.40
codegen_flags: <defaults>
</compile_context>

<pallas_src>
import functools

import jax
import jax.numpy as jnp
from jax import lax
from jax.experimental import pallas as pl
from jax.experimental.pallas import tpu as pltpu


# ----------------------------- Pallas kernel --------------------------------


def _resnet_block_kernel(xp_ref, w1_ref, b1_ref, w2_ref, b2_ref, o_ref, y1_ref,
                         *, dim, height, width, tile_h, dilation):
    """Fused: conv1(+BN folded)+LeakyReLU -> reflect-pad -> conv2(+BN) -> +x.

    xp_ref : (1, H+2d, W+2d, C) f32  reflection-padded input (full image, resident)
    w*_ref : (9C, C) bf16            BN-scale-folded im2col weights
    b*_ref : (1, C)  f32             folded BN bias
    o_ref  : (1, TILE_H, W, C) f32   output row tile
    y1_ref : (TILE_H+2, W, C) bf16   VMEM scratch holding the y1 window (+1 halo row)
    """
    C, H, W, TH, d = dim, height, width, tile_h, dilation
    t = pl.program_id(1)
    r0 = t * TH                                    # first output row of this tile
    THE = TH + 2                                   # y1 rows computed (with halo)
    # y1 window of THE rows fully inside [0, H) that covers rows {r0-1 .. r0+TH}
    # after boundary reflection.
    c0 = jnp.clip(r0 - 1, 0, H - TH - 2)

    # ---- conv1 (BN scale folded into w1) + bias + LeakyReLU over the window ----
    xw = xp_ref[0, pl.ds(c0, THE + 2 * d), :, :].astype(jnp.bfloat16)  # (THE+2d, W+2d, C)
    taps1 = jnp.concatenate(
        [xw[ky * d:ky * d + THE, kx * d:kx * d + W, :]
         for ky in range(3) for kx in range(3)], axis=-1)              # (THE, W, 9C)
    acc1 = jnp.dot(taps1.reshape(THE * W, 9 * C), w1_ref[...],
                   preferred_element_type=jnp.float32)                 # (THE*W, C) f32
    y1 = acc1 + b1_ref[...]
    y1 = jnp.where(y1 >= 0.0, y1, jnp.float32(0.2) * y1)
    y1_ref[...] = y1.reshape(THE, W, C).astype(jnp.bfloat16)

    # ---- reflection pad y1 (rows picked from the window, cols statically) ----
    top = jnp.where(r0 == 0, 1, r0 - 1) - c0            # reflected row r0-1
    mid = r0 - c0
    bot = jnp.where(r0 + TH == H, H - 2, r0 + TH) - c0  # reflected row r0+TH
    rows = jnp.concatenate([y1_ref[pl.ds(top, 1), :, :],
                            y1_ref[pl.ds(mid, TH), :, :],
                            y1_ref[pl.ds(bot, 1), :, :]], axis=0)      # (TH+2, W, C)
    y1p = jnp.concatenate([rows[:, 1:2, :], rows, rows[:, W - 2:W - 1, :]],
                          axis=1)                                      # (TH+2, W+2, C)

    # ---- conv2 (BN folded) + bias + residual ----
    taps2 = jnp.concatenate(
        [y1p[ky:ky + TH, kx:kx + W, :] for ky in range(3) for kx in range(3)],
        axis=-1)                                                       # (TH, W, 9C)
    acc2 = jnp.dot(taps2.reshape(TH * W, 9 * C), w2_ref[...],
                   preferred_element_type=jnp.float32)                 # (TH*W, C) f32
    y2 = acc2 + b2_ref[...]
    x_res = xp_ref[0, pl.ds(r0 + d, TH), d:d + W, :]                   # (TH, W, C) f32
    o_ref[0] = (x_res + y2.reshape(TH, W, C)).astype(o_ref.dtype)


# ------------------------------ JAX wrapper ----------------------------------


def _reflect_pad_nhwc(x, p):
    return jnp.pad(x, ((0, 0), (p, p), (p, p), (0, 0)), mode="reflect")


def _pick_row_tile(h, max_tile=128):
    """Largest divisor of h that leaves room for the +/-1 halo of conv2."""
    for th in range(min(h - 2, max_tile), 0, -1):
        if h % th == 0:
            return th
    # TODO(synk): H <= 2 needs a non-tiled fallback.
    raise NotImplementedError("spatial height too small for fused row tiling")


def resnet_block_pallas(x_nchw, params, dilation=1):
    """Forward of ResnetBlock. x_nchw: (N, C, H, W) float32."""
    w1, s1, b1, w2, s2, b2 = params
    n, c, h, w = x_nchw.shape
    d = dilation
    assert d < h and d < w, "reflection pad requires dilation < spatial dims"
    th = _pick_row_tile(h)

    x = jnp.transpose(x_nchw, (0, 2, 3, 1))                    # NHWC
    xp = _reflect_pad_nhwc(x, d)                               # (N, H+2d, W+2d, C)

    # Fold BN scale into conv weights (per output channel); bf16 MXU operands.
    # im2col weight layout: ((ky*3+kx)*C + ci, co)
    w1f = (w1 * s1.reshape(1, 1, 1, c)).reshape(9 * c, c).astype(jnp.bfloat16)
    w2f = (w2 * s2.reshape(1, 1, 1, c)).reshape(9 * c, c).astype(jnp.bfloat16)

    kernel = functools.partial(_resnet_block_kernel, dim=c, height=h, width=w,
                               tile_h=th, dilation=d)
    out = pl.pallas_call(
        kernel,
        out_shape=jax.ShapeDtypeStruct((n, h, w, c), jnp.float32),
        grid=(n, h // th),
        in_specs=[
            # padded image: same block across the row-tile axis -> fetched once per n
            pl.BlockSpec((1, h + 2 * d, w + 2 * d, c), lambda i, j: (i, 0, 0, 0)),
            pl.BlockSpec((9 * c, c), lambda i, j: (0, 0)),
            pl.BlockSpec((1, c), lambda i, j: (0, 0)),
            pl.BlockSpec((9 * c, c), lambda i, j: (0, 0)),
            pl.BlockSpec((1, c), lambda i, j: (0, 0)),
        ],
        out_specs=pl.BlockSpec((1, th, w, c), lambda i, j: (i, j, 0, 0)),
        scratch_shapes=[pltpu.VMEM((th + 2, w, c), jnp.bfloat16)],
        compiler_params=pltpu.CompilerParams(
            dimension_semantics=("parallel", "parallel"),
            vmem_limit_bytes=32 * 1024 * 1024),   # fits v7x's smaller VMEM budget
    )(xp, w1f, b1, w2f, b2)

    return jnp.transpose(out, (0, 3, 1, 2))                    # back to NCHW


# ------------------------ pure-JAX references (check) -------------------------


def resnet_block_ref(x_nchw, params, dilation=1, matmul_dtype=jnp.float32):
    """Reference. matmul_dtype=bfloat16 mirrors the kernel's operand precision."""
    w1, s1, b1, w2, s2, b2 = params
    d = dilation
    c = x_nchw.shape[1]
    x = jnp.transpose(x_nchw, (0, 2, 3, 1))
    dn = ("NHWC", "HWIO", "NHWC")

    def q(a):
        return a.astype(matmul_dtype).astype(jnp.float32)

    w1f = q(w1 * s1.reshape(1, 1, 1, c))
    w2f = q(w2 * s2.reshape(1, 1, 1, c))
    y = lax.conv_general_dilated(q(_reflect_pad_nhwc(x, d)), w1f, (1, 1), "VALID",
                                 rhs_dilation=(d, d), dimension_numbers=dn)
    y = y + b1
    y = jnp.where(y >= 0, y, 0.2 * y)
    z = lax.conv_general_dilated(_reflect_pad_nhwc(q(y), 1), w2f, (1, 1), "VALID",
                                 dimension_numbers=dn)
    z = z + b2
    return jnp.transpose(x + z, (0, 3, 1, 2))


# ------------------------------- main ----------------------------------------


def _make_params(key, c):
    """Deterministic params. Conv weights HWIO; BN running stats to fold."""
    ks = jax.random.split(key, 10)
    eps = 1e-5

    def bn_fold(kg, kb, km, kv):
        gamma = jax.random.uniform(kg, (c,), jnp.float32, 0.5, 1.5)
        beta = 0.1 * jax.random.normal(kb, (c,), jnp.float32)
        rmean = 0.1 * jax.random.normal(km, (c,), jnp.float32)
        rvar = jax.random.uniform(kv, (c,), jnp.float32, 0.5, 1.5)
        scale = gamma / jnp.sqrt(rvar + eps)
        bias = beta - rmean * scale
        return scale.reshape(1, c), bias.reshape(1, c)

    w1 = 0.1 * jax.random.normal(ks[0], (3, 3, c, c), jnp.float32)   # HWIO
    w2 = 0.1 * jax.random.normal(ks[1], (3, 3, c, c), jnp.float32)
    s1, b1 = bn_fold(ks[2], ks[3], ks[4], ks[5])
    s2, b2 = bn_fold(ks[6], ks[7], ks[8], ks[9])
    return (w1, s1, b1, w2, s2, b2)


if __name__ == "__main__":
    N, C, H, W = 2, 32, 16, 16
    dilation = 1

    key = jax.random.PRNGKey(0)
    kx, kp = jax.random.split(key)
    x = jax.random.normal(kx, (N, C, H, W), jnp.float32)
    params = _make_params(kp, C)

    fwd = jax.jit(functools.partial(resnet_block_pallas, dilation=dilation))
    out = jax.block_until_ready(fwd(x, params))
    assert out.shape == (N, C, H, W)

    # precision-matched reference (same bf16 operand rounding, f32 accumulation)
    ref_bf16 = resnet_block_ref(x, params, dilation=dilation,
                                matmul_dtype=jnp.bfloat16)
    assert jnp.allclose(out, ref_bf16, atol=5e-3, rtol=5e-3), \
        "mismatch vs precision-matched reference"

    # loose sanity check vs the pure-f32 module semantics (bf16 operand error)
    ref_f32 = resnet_block_ref(x, params, dilation=dilation,
                               matmul_dtype=jnp.float32)
    assert jnp.allclose(out, ref_f32, atol=0.15, rtol=0.05), \
        "mismatch vs f32 reference"

    print("KERNEL_OK")
</pallas_src>

<mosaic_0001>
module attributes {stable_mosaic.version = 11 : i64} {
  func.func @_resnet_block_kernel(%arg0: i32, %arg1: i32, %arg2: memref<1x18x18x32xf32, #tpu.memory_space<vmem>>, %arg3: memref<288x32xbf16, #tpu.memory_space<vmem>>, %arg4: memref<1x32xf32, #tpu.memory_space<vmem>>, %arg5: memref<288x32xbf16, #tpu.memory_space<vmem>>, %arg6: memref<1x32xf32, #tpu.memory_space<vmem>>, %arg7: memref<1x8x16x32xf32, #tpu.memory_space<vmem>>, %arg8: memref<10x16x32xbf16, #tpu.memory_space<vmem>>) attributes {dimension_semantics = [#tpu.dimension_semantics<parallel>, #tpu.dimension_semantics<parallel>], iteration_bounds = array<i64: 2, 2>, scalar_prefetch = 0 : i64, scratch_operands = 1 : i64, tpu.core_type = #tpu.core_type<tc>, window_params = [{transform_indices = @transform_0, window_bounds = array<i64: 1, 18, 18, 32>}, {pipeline_mode = #tpu.pipeline_mode<synchronous>, transform_indices = @transform_1, window_bounds = array<i64: 288, 32>}, {pipeline_mode = #tpu.pipeline_mode<synchronous>, transform_indices = @transform_2, window_bounds = array<i64: 1, 32>}, {pipeline_mode = #tpu.pipeline_mode<synchronous>, transform_indices = @transform_3, window_bounds = array<i64: 288, 32>}, {pipeline_mode = #tpu.pipeline_mode<synchronous>, transform_indices = @transform_4, window_bounds = array<i64: 1, 32>}, {transform_indices = @transform_5, window_bounds = array<i64: 1, 8, 16, 32>}]} {
    %c8_i32 = arith.constant 8 : i32
    %0 = arith.muli %arg1, %c8_i32 : i32
    %c1_i32 = arith.constant 1 : i32
    %1 = arith.subi %0, %c1_i32 : i32
    %c0_i32 = arith.constant 0 : i32
    %c6_i32 = arith.constant 6 : i32
    %2 = arith.maxsi %c0_i32, %1 : i32
    %3 = arith.minsi %c6_i32, %2 : i32
    %c0 = arith.constant 0 : index
    %4 = arith.index_cast %3 : i32 to index
    %c0_0 = arith.constant 0 : index
    %c0_1 = arith.constant 0 : index
    %5 = vector.load %arg2[%c0, %4, %c0_0, %c0_1] : memref<1x18x18x32xf32, #tpu.memory_space<vmem>>, vector<1x12x18x32xf32>
    %6 = vector.shape_cast %5 : vector<1x12x18x32xf32> to vector<12x18x32xf32>
    %7 = arith.truncf %6 : vector<12x18x32xf32> to vector<12x18x32xbf16>
    %8 = vector.extract_strided_slice %7 {offsets = [0, 0, 0], sizes = [10, 16, 32], strides = [1, 1, 1]} : vector<12x18x32xbf16> to vector<10x16x32xbf16>
    %9 = vector.extract_strided_slice %7 {offsets = [0, 1, 0], sizes = [10, 16, 32], strides = [1, 1, 1]} : vector<12x18x32xbf16> to vector<10x16x32xbf16>
    %10 = vector.extract_strided_slice %7 {offsets = [0, 2, 0], sizes = [10, 16, 32], strides = [1, 1, 1]} : vector<12x18x32xbf16> to vector<10x16x32xbf16>
    %11 = vector.extract_strided_slice %7 {offsets = [1, 0, 0], sizes = [10, 16, 32], strides = [1, 1, 1]} : vector<12x18x32xbf16> to vector<10x16x32xbf16>
    %12 = vector.extract_strided_slice %7 {offsets = [1, 1, 0], sizes = [10, 16, 32], strides = [1, 1, 1]} : vector<12x18x32xbf16> to vector<10x16x32xbf16>
    %13 = vector.extract_strided_slice %7 {offsets = [1, 2, 0], sizes = [10, 16, 32], strides = [1, 1, 1]} : vector<12x18x32xbf16> to vector<10x16x32xbf16>
    %14 = vector.extract_strided_slice %7 {offsets = [2, 0, 0], sizes = [10, 16, 32], strides = [1, 1, 1]} : vector<12x18x32xbf16> to vector<10x16x32xbf16>
    %15 = vector.extract_strided_slice %7 {offsets = [2, 1, 0], sizes = [10, 16, 32], strides = [1, 1, 1]} : vector<12x18x32xbf16> to vector<10x16x32xbf16>
    %16 = vector.extract_strided_slice %7 {offsets = [2, 2, 0], sizes = [10, 16, 32], strides = [1, 1, 1]} : vector<12x18x32xbf16> to vector<10x16x32xbf16>
    %17 = tpu.concatenate %8, %9, %10, %11, %12, %13, %14, %15, %16 in 2 : vector<10x16x32xbf16>, vector<10x16x32xbf16>, vector<10x16x32xbf16>, vector<10x16x32xbf16>, vector<10x16x32xbf16>, vector<10x16x32xbf16>, vector<10x16x32xbf16>, vector<10x16x32xbf16>, vector<10x16x32xbf16> -> vector<10x16x288xbf16>
    %18 = vector.shape_cast %17 : vector<10x16x288xbf16> to vector<160x288xbf16>
    %c0_2 = arith.constant 0 : index
    %c0_3 = arith.constant 0 : index
    %19 = vector.load %arg3[%c0_2, %c0_3] : memref<288x32xbf16, #tpu.memory_space<vmem>>, vector<288x32xbf16>
    %cst = arith.constant dense<0.000000e+00> : vector<160x32xf32>
    %20 = tpu.matmul %18, %19, %cst {dimension_numbers = #tpu.dot_dimension_numbers<[1], [0], [0], [1], [0, 0, 1, 1], [], []>} : vector<160x288xbf16>, vector<288x32xbf16>, vector<160x32xf32> -> vector<160x32xf32>
    %c0_4 = arith.constant 0 : index
    %c0_5 = arith.constant 0 : index
    %21 = vector.load %arg4[%c0_4, %c0_5] : memref<1x32xf32, #tpu.memory_space<vmem>>, vector<1x32xf32>
    %22 = vector.broadcast %21 : vector<1x32xf32> to vector<160x32xf32>
    %23 = arith.addf %20, %22 : vector<160x32xf32>
    %cst_6 = arith.constant 0.000000e+00 : f32
    %24 = vector.broadcast %cst_6 : f32 to vector<160x32xf32>
    %25 = arith.cmpf oge, %23, %24 : vector<160x32xf32>
    %cst_7 = arith.constant 2.000000e-01 : f32
    %26 = vector.broadcast %cst_7 : f32 to vector<160x32xf32>
    %27 = arith.mulf %26, %23 : vector<160x32xf32>
    %28 = arith.select %25, %23, %27 : vector<160x32xi1>, vector<160x32xf32>
    %29 = vector.shape_cast %28 : vector<160x32xf32> to vector<10x16x32xf32>
    %30 = arith.truncf %29 : vector<10x16x32xf32> to vector<10x16x32xbf16>
    %c0_8 = arith.constant 0 : index
    %c0_9 = arith.constant 0 : index
    %c0_10 = arith.constant 0 : index
    %31 = vector.load %arg8[%c0_8, %c0_9, %c0_10] : memref<10x16x32xbf16, #tpu.memory_space<vmem>>, vector<10x16x32xbf16>
    tpu.vector_store %arg8[%c0_8, %c0_9, %c0_10], %30 {strides = array<i32>} : memref<10x16x32xbf16, #tpu.memory_space<vmem>>, vector<10x16x32xbf16>,
    %c0_i32_11 = arith.constant 0 : i32
    %32 = arith.cmpi eq, %0, %c0_i32_11 : i32
    %c1_i32_12 = arith.constant 1 : i32
    %33 = arith.subi %0, %c1_i32_12 : i32
    %c1_i32_13 = arith.constant 1 : i32
    %34 = arith.select %32, %c1_i32_13, %33 : i32
    %35 = arith.subi %34, %3 : i32
    %36 = arith.subi %0, %3 : i32
    %c8_i32_14 = arith.constant 8 : i32
    %37 = arith.addi %0, %c8_i32_14 : i32
    %c16_i32 = arith.constant 16 : i32
    %38 = arith.cmpi eq, %37, %c16_i32 : i32
    %c8_i32_15 = arith.constant 8 : i32
    %39 = arith.addi %0, %c8_i32_15 : i32
    %c14_i32 = arith.constant 14 : i32
    %40 = arith.select %38, %c14_i32, %39 : i32
    %41 = arith.subi %40, %3 : i32
    %42 = arith.index_cast %35 : i32 to index
    %c0_16 = arith.constant 0 : index
    %c0_17 = arith.constant 0 : index
    %43 = vector.load %arg8[%42, %c0_16, %c0_17] : memref<10x16x32xbf16, #tpu.memory_space<vmem>>, vector<1x16x32xbf16>
    %44 = arith.index_cast %36 : i32 to index
    %c0_18 = arith.constant 0 : index
    %c0_19 = arith.constant 0 : index
    %45 = vector.load %arg8[%44, %c0_18, %c0_19] : memref<10x16x32xbf16, #tpu.memory_space<vmem>>, vector<8x16x32xbf16>
    %46 = arith.index_cast %41 : i32 to index
    %c0_20 = arith.constant 0 : index
    %c0_21 = arith.constant 0 : index
    %47 = vector.load %arg8[%46, %c0_20, %c0_21] : memref<10x16x32xbf16, #tpu.memory_space<vmem>>, vector<1x16x32xbf16>
    %48 = tpu.concatenate %43, %45, %47 in 0 : vector<1x16x32xbf16>, vector<8x16x32xbf16>, vector<1x16x32xbf16> -> vector<10x16x32xbf16>
    %49 = vector.extract_strided_slice %48 {offsets = [0, 1, 0], sizes = [10, 1, 32], strides = [1, 1, 1]} : vector<10x16x32xbf16> to vector<10x1x32xbf16>
    %50 = vector.extract_strided_slice %48 {offsets = [0, 14, 0], sizes = [10, 1, 32], strides = [1, 1, 1]} : vector<10x16x32xbf16> to vector<10x1x32xbf16>
    %51 = tpu.concatenate %49, %48, %50 in 1 : vector<10x1x32xbf16>, vector<10x16x32xbf16>, vector<10x1x32xbf16> -> vector<10x18x32xbf16>
    %52 = vector.extract_strided_slice %51 {offsets = [0, 0, 0], sizes = [8, 16, 32], strides = [1, 1, 1]} : vector<10x18x32xbf16> to vector<8x16x32xbf16>
    %53 = vector.extract_strided_slice %51 {offsets = [0, 1, 0], sizes = [8, 16, 32], strides = [1, 1, 1]} : vector<10x18x32xbf16> to vector<8x16x32xbf16>
    %54 = vector.extract_strided_slice %51 {offsets = [0, 2, 0], sizes = [8, 16, 32], strides = [1, 1, 1]} : vector<10x18x32xbf16> to vector<8x16x32xbf16>
    %55 = vector.extract_strided_slice %51 {offsets = [1, 0, 0], sizes = [8, 16, 32], strides = [1, 1, 1]} : vector<10x18x32xbf16> to vector<8x16x32xbf16>
    %56 = vector.extract_strided_slice %51 {offsets = [1, 1, 0], sizes = [8, 16, 32], strides = [1, 1, 1]} : vector<10x18x32xbf16> to vector<8x16x32xbf16>
    %57 = vector.extract_strided_slice %51 {offsets = [1, 2, 0], sizes = [8, 16, 32], strides = [1, 1, 1]} : vector<10x18x32xbf16> to vector<8x16x32xbf16>
    %58 = vector.extract_strided_slice %51 {offsets = [2, 0, 0], sizes = [8, 16, 32], strides = [1, 1, 1]} : vector<10x18x32xbf16> to vector<8x16x32xbf16>
    %59 = vector.extract_strided_slice %51 {offsets = [2, 1, 0], sizes = [8, 16, 32], strides = [1, 1, 1]} : vector<10x18x32xbf16> to vector<8x16x32xbf16>
    %60 = vector.extract_strided_slice %51 {offsets = [2, 2, 0], sizes = [8, 16, 32], strides = [1, 1, 1]} : vector<10x18x32xbf16> to vector<8x16x32xbf16>
    %61 = tpu.concatenate %52, %53, %54, %55, %56, %57, %58, %59, %60 in 2 : vector<8x16x32xbf16>, vector<8x16x32xbf16>, vector<8x16x32xbf16>, vector<8x16x32xbf16>, vector<8x16x32xbf16>, vector<8x16x32xbf16>, vector<8x16x32xbf16>, vector<8x16x32xbf16>, vector<8x16x32xbf16> -> vector<8x16x288xbf16>
    %62 = vector.shape_cast %61 : vector<8x16x288xbf16> to vector<128x288xbf16>
    %c0_22 = arith.constant 0 : index
    %c0_23 = arith.constant 0 : index
    %63 = vector.load %arg5[%c0_22, %c0_23] : memref<288x32xbf16, #tpu.memory_space<vmem>>, vector<288x32xbf16>
    %cst_24 = arith.constant dense<0.000000e+00> : vector<128x32xf32>
    %64 = tpu.matmul %62, %63, %cst_24 {dimension_numbers = #tpu.dot_dimension_numbers<[1], [0], [0], [1], [0, 0, 1, 1], [], []>} : vector<128x288xbf16>, vector<288x32xbf16>, vector<128x32xf32> -> vector<128x32xf32>
    %c0_25 = arith.constant 0 : index
    %c0_26 = arith.constant 0 : index
    %65 = vector.load %arg6[%c0_25, %c0_26] : memref<1x32xf32, #tpu.memory_space<vmem>>, vector<1x32xf32>
    %66 = vector.broadcast %65 : vector<1x32xf32> to vector<128x32xf32>
    %67 = arith.addf %64, %66 : vector<128x32xf32>
    %c1_i32_27 = arith.constant 1 : i32
    %68 = arith.addi %0, %c1_i32_27 : i32
    %c0_28 = arith.constant 0 : index
    %69 = arith.index_cast %68 : i32 to index
    %c1 = arith.constant 1 : index
    %c0_29 = arith.constant 0 : index
    %70 = vector.load %arg2[%c0_28, %69, %c1, %c0_29] : memref<1x18x18x32xf32, #tpu.memory_space<vmem>>, vector<1x8x16x32xf32>
    %71 = vector.shape_cast %70 : vector<1x8x16x32xf32> to vector<8x16x32xf32>
    %72 = vector.shape_cast %67 : vector<128x32xf32> to vector<8x16x32xf32>
    %73 = arith.addf %71, %72 : vector<8x16x32xf32>
    %c0_30 = arith.constant 0 : index
    %c0_31 = arith.constant 0 : index
    %c0_32 = arith.constant 0 : index
    %c0_33 = arith.constant 0 : index
    %74 = vector.load %arg7[%c0_30, %c0_31, %c0_32, %c0_33] : memref<1x8x16x32xf32, #tpu.memory_space<vmem>>, vector<1x8x16x32xf32>
    %75 = vector.shape_cast %74 : vector<1x8x16x32xf32> to vector<8x16x32xf32>
    %76 = vector.shape_cast %73 : vector<8x16x32xf32> to vector<1x8x16x32xf32>
    tpu.vector_store %arg7[%c0_30, %c0_31, %c0_32, %c0_33], %76 {strides = array<i32>} : memref<1x8x16x32xf32, #tpu.memory_space<vmem>>, vector<1x8x16x32xf32>,
    return
  }
  func.func @transform_0(%arg0: i32, %arg1: i32) -> (i32, i32, i32, i32) {
    %c0_i32 = arith.constant 0 : i32
    %c0_i32_0 = arith.constant 0 : i32
    %c0_i32_1 = arith.constant 0 : i32
    %c0_i32_2 = arith.constant 0 : i32
    return %arg0, %c0_i32, %c0_i32_0, %c0_i32_1 : i32, i32, i32, i32
  }
  func.func @transform_1(%arg0: i32, %arg1: i32) -> (i32, i32) {
    %c0_i32 = arith.constant 0 : i32
    %c0_i32_0 = arith.constant 0 : i32
    %c0_i32_1 = arith.constant 0 : i32
    return %c0_i32, %c0_i32_0 : i32, i32
  }
  func.func @transform_2(%arg0: i32, %arg1: i32) -> (i32, i32) {
    %c0_i32 = arith.constant 0 : i32
    %c0_i32_0 = arith.constant 0 : i32
    %c0_i32_1 = arith.constant 0 : i32
    return %c0_i32, %c0_i32_0 : i32, i32
  }
  func.func @transform_3(%arg0: i32, %arg1: i32) -> (i32, i32) {
    %c0_i32 = arith.constant 0 : i32
    %c0_i32_0 = arith.constant 0 : i32
    %c0_i32_1 = arith.constant 0 : i32
    return %c0_i32, %c0_i32_0 : i32, i32
  }
  func.func @transform_4(%arg0: i32, %arg1: i32) -> (i32, i32) {
    %c0_i32 = arith.constant 0 : i32
    %c0_i32_0 = arith.constant 0 : i32
    %c0_i32_1 = arith.constant 0 : i32
    return %c0_i32, %c0_i32_0 : i32, i32
  }
  func.func @transform_5(%arg0: i32, %arg1: i32) -> (i32, i32, i32, i32) {
    %c0_i32 = arith.constant 0 : i32
    %c0_i32_0 = arith.constant 0 : i32
    %c0_i32_1 = arith.constant 0 : i32
    return %arg0, %arg1, %c0_i32, %c0_i32_0 : i32, i32, i32, i32
  }
}

</mosaic_0001>

<bundles_post_ra>
// kernel: resnet_block_pallas.1
= control target key start
LH: loop header
LB: loop body
LE: loop exit
PB: predicated region body
PF: predicated region fallthrough
CT: control target
= control target key end

     0   :  { %s4178_s0 = inlined_call_operand.vmem [shape: f32[2,18,18,32], index: 0, kind: input, shape index: {}]   ;;  %s4179_s1 = inlined_call_operand.vmem [shape: bf16[288,32], index: 1, kind: input, shape index: {}]   ;;  %s4180_s2 = inlined_call_operand.vmem [shape: f32[1,32], index: 2, kind: input, shape index: {}]   ;;  %s4181_s3 = inlined_call_operand.vmem [shape: bf16[288,32], index: 3, kind: input, shape index: {}]   ;;  %s4182_s4 = inlined_call_operand.vmem [shape: f32[1,32], index: 4, kind: input, shape index: {}]   ;;  %s4183_s5 = inlined_call_operand.hbm [shape: f32[2,16,16,32], index: 5, kind: output, shape index: {}]  }
   0x1   :  { %4188 = sst [smem:[#allocation6_spill]] %s4178_s0 }
   0x2   :  { %4189 = sst [smem:[#allocation7_spill]] %s4179_s1 }
   0x3   :  { %4190 = sst [smem:[#allocation8_spill]] %s4180_s2 }
   0x4   :  { %10 = vsyncpa [#allocation4], 0 }
   0x5   :  { %12 = vsyncpa [#allocation4 + $0x1], 0  ;;  %s3015_s18 = smov 0   ;;  %s3017_s19 = smov 0  }
   0x6   :  { %s3019_s20 = smov 0   ;;  %s3021_s21 = smov 0  }
   0x7   :  { %s3023_s22 = smov 0   ;;  %s3025_s23 = smov 0  }
   0x8   :  { %s3027_s24 = smov 0   ;;  %s3029_s25 = smov 0  }
   0x9 LB: > { %s2499_s26 = sadd.s32 4294967295, %s2978_s25   ;;  %s2500_s27 = sadd.s32 4294967294, %s2978_s25   ;;  %s2978_s25 = sphi %s3029_s25, %s18_s25   ;;  %s2974_s24 = sphi %s3027_s24, %s4206_s24   ;;  %s2970_s23 = sphi %s3025_s23, %s4205_s23   ;;  %s2966_s22 = sphi %s3023_s22, %s4204_s22   ;;  %s2962_s21 = sphi %s3021_s21, %s4203_s21   ;;  %s2958_s20 = sphi %s3019_s20, %s4202_s20   ;;  %s2954_s19 = sphi %s3017_s19, %s4201_s19   ;;  %s2950_s18 = sphi %s3015_s18, %s4200_s18  }
   0xa   : > { %s27_s28 = sadd.s32 1, %s2970_s23  ;;  %s30_s29 = sadd.s32 1, %s2974_s24 }
   0xb   : > { %p28_p0 = scmp.ge.s32.totalorder %s27_s28, 2  ;;  %p159_p1 = scmp.ne.s32.totalorder %s2958_s20, %s2954_s19 }
   0xc   : > { %p160_p2 = scmp.eq.s32.totalorder %s2499_s26, 3  ;;  %p165_p5 = scmp.ne.s32.totalorder %s2954_s19, %s2950_s18 }
   0xd   : > { %s4208_s28 = smov (%p28_p0, %s27_s28), 0  ;;  %s4210_s29 = smov (!%p28_p0, %s30_s29), %s2974_s24 }
   0xe   : > { %s145_s30 = ssub.s32 %s2970_s23, %s4208_s28  ;;  %p3066_p3 = por %p160_p2, %p159_p1 }
   0xf   : > { %p32_p4 = scmp.ge.s32.totalorder %s4210_s29, 2  ;;  %p166_p6 = scmp.eq.s32.totalorder %s2500_s27, 3 }
  0x10   : > { %p2503_p7 = scmp.ge.s32.totalorder %s2978_s25, 1  ;;  %p204_p9 = scmp.lt.s32.totalorder %s2978_s25, 5 }
  0x11   : > { %s4212_s29 = smov (%p32_p4, %s4210_s29), 0  ;;  %p3075_p8 = por %p166_p6, %p165_p5 }
  0x12   : > { %s144_s8 = ssub.s32 %s2974_s24, %s4212_s29  ;;  %s149_s9 = sadd.s32 1, %s2958_s20 }
  0x13   : > { %s146_s10 = sor.u32 %s145_s30, %s144_s8  ;;  %p205_p10 = pnand %p2503_p7, %p204_p9 }
  0x14   : > { %p147_p11 = scmp.eq.s32.totalorder %s146_s10, 0  ;;  %p232_p12 = scmp.lt.s32.totalorder (!%p205_p10), %s2966_s22, 1 }
  0x15   : > { %208 = sbr.rel (%p205_p10) target bundleno = 1004 (0x3ec), region = 40  ;;  %s3088_s12 = sshll.u32 (!%p205_p10), %s2962_s21, 3 }
  0x16   : > { %s3084_s11 = scalar_select %p147_p11, %s2958_s20, %s149_s9  }
  0x17   : > { %s3091_s13 = sadd.s32 (!%p205_p10), 4294967295, %s3088_s12  ;;  %s4193_s0 = sld [smem:[#allocation6_spill]] (!%p205_p10) }
  0x18   : > { %p241_p13 = scmp.gt.s32.totalorder (!%p205_p10), %s3091_s13, 0  ;;  %p2508_p0 = scmp.lt.s32.totalorder (!%p205_p10), %s3091_s13, 6 }
  0x19   : > { %s2980_s9 = smov (!%p205_p10), 96   ;;  %s4184_s10 = smov (!%p205_p10), 32  }
  0x1a   : > { %s233_s14 = scalar_select %p232_p12, %s2966_s22, 1  ;;  %vm399_vm0 = vsmask.f32 7424  ;;  %vm540_vm1 = vcmask 1046528   ;;  %vm717_vm2 = vcmask 261120   ;;  %vm738_vm3 = vcmask 523264  }
  0x1b   : > { %s242_s16 = scalar_select %p241_p13, %s3091_s13, 0  ;;  %vm759_vm4 = vcmask 785408   ;;  %vm1305_vm6 = vcmask 257024  }
  0x1c   : > { %s2805_s15 = smul.u32 432, %s233_s14  ;;  %s4186_s14 = smov 64  }
  0x1d   : > { %s4214_s16 = smov (!%p2508_p0, %s242_s16), 6  ;;  %s4194_s1 = sld [smem:[#allocation7_spill]] }
  0x1e   : > { %s3102_s27 = scalar_lea.vmem %s4193_s0, %s2805_s15  ;;  %s245_s30 = smul.u32 24, %s4214_s16 }
  0x1f   : > { %s4195_s15 = smov 32   ;;  %s4196_s17 = smov 64  }
  0x20   : > { %s3106_s8 = scalar_lea.vmem %s3102_s27, %s245_s30  ;;  %s4197_s2 = sld [smem:[#allocation8_spill]] }
  0x21   : > { %v247_v0 = vld [vmem:[%s3106_s8] sm:$0xff]  ;;  %v248_v1 = vld [vmem:[%s3106_s8 + $0x8] sm:$0xff]  ;;  %v249_v2 = vld [vmem:[%s3106_s8 + $0x10] sm:$0x3]  ;;  %s1330_s30 = sadd.s32 8, %s3088_s12  ;;  %p1326_p1 = scmp.eq.s32.totalorder %s3088_s12, 0 }
  0x22   : > { %v283_v3 = vpack.c.bf16 %v247_v0, %v247_v0  ;;  %v284_v4 = vpack.c.bf16 %v248_v1, %v248_v1  ;;  %v285_v5 = vpack.c.bf16 %v249_v2, %v249_v2  ;;  %v250_v6 = vld [vmem:[%s3106_s8 + $0x18] sm:$0xff]  ;;  %v251_v7 = vld [vmem:[%s3106_s8 + $0x20] sm:$0xff]  ;;  %v252_v8 = vld [vmem:[%s3106_s8 + $0x28] sm:$0x3]  ;;  %p1331_p2 = scmp.eq.s32.totalorder %s1330_s30, 16 }
  0x23   : > { %v286_v9 = vpack.c.bf16 %v250_v6, %v250_v6  ;;  %v287_v10 = vpack.c.bf16 %v251_v7, %v251_v7  ;;  %v288_v11 = vpack.c.bf16 %v252_v8, %v252_v8  ;;  %v253_v12 = vld [vmem:[%s3106_s8 + $0x30] sm:$0xff]  ;;  %v254_v13 = vld [vmem:[%s3106_s8 + $0x38] sm:$0xff]  ;;  %v255_v17 = vld [vmem:[%s3106_s8 + $0x40] sm:$0x3]  ;;  %s4216_s13 = smov (%p1326_p1, %s3091_s13), 1 }
  0x24   : > { %v339_v14 = vunpack.c.l.b16 %v283_v3  ;;  %v340_v15 = vunpack.c.l.b16 %v284_v4  ;;  %v379_v16 = vunpack.c.l.b16 %v285_v5  ;;  %v289_v18 = vpack.c.bf16 %v253_v12, %v253_v12  ;;  %v256_v47 = vld [vmem:[%s3106_s8 + $0x48] sm:$0xff]  ;;  %v257_v48 = vld [vmem:[%s3106_s8 + $0x50] sm:$0xff]  ;;  %v258_v59 = vld [vmem:[%s3106_s8 + $0x58] sm:$0x3]  ;;  %s4218_s30 = smov (%p1331_p2, %s1330_s30), 14  ;;  %s1328_s0 = ssub.s32 %s4216_s13, %s4214_s16 }
  0x25   : > { %v341_v19 = vunpack.c.l.b16 %v286_v9  ;;  %v342_v20 = vunpack.c.l.b16 %v287_v10  ;;  %v380_v21 = vunpack.c.l.b16 %v288_v11  ;;  %v290_v22 = vpack.c.bf16 %v254_v13, %v254_v13  ;;  %v259_v11 = vld [vmem:[%s3106_s8 + $0x60] sm:$0xff]  ;;  %v260_v12 = vld [vmem:[%s3106_s8 + $0x68] sm:$0xff] }
  0x26   : > { %v3117_v23 = vpack.c.b16 %v340_v15, %v339_v14  ;;  %v389_v24 = vpack.c.b16 %v379_v16, %v379_v16  ;;  %v291_v27 = vpack.c.bf16 %v255_v17, %v255_v17  ;;  %v343_v28 = vunpack.c.l.b16 %v289_v18 }
  0x27   : > { %v3119_v25 = vpack.c.b16 %v342_v20, %v341_v19  ;;  %v390_v26 = vpack.c.b16 %v380_v21, %v380_v21  ;;  %v344_v32 = vunpack.c.l.b16 %v290_v22  ;;  %v292_v55 = vpack.c.bf16 %v256_v47, %v256_v47  ;;  %v261_v20 = vld [vmem:[%s3106_s8 + $0x70] sm:$0x3] }
  0x28   : > { %v401_v29 = vshrl.u32 %v3117_v23, 16  ;;  %v403_v30 = vshll.u32 %v3117_v23, 16  ;;  %v408_v31 = vshll.u32 %v389_v24, 16  ;;  %v381_v43 = vunpack.c.l.b16 %v291_v27 }
  0x29   : > { %596 = vrot.lane.b32.xlu1 %v3119_v25, %s2980_s9  ;;  %v413_v33 = vshrl.u32 %v3119_v25, 16  ;;  %v415_v34 = vshll.u32 %v3119_v25, 16  ;;  %v420_v35 = vshll.u32 %v390_v26, 16  ;;  %v544_v40 = vrot.slane %v3119_v25, 1 }
  0x2a   : > { %v405_v36 = vrot.slane %v403_v30, 1  ;;  %v410_v37 = vrot.slane %v408_v31, 1  ;;  %v3128_v42 = vpack.c.b16 %v344_v32, %v343_v28  ;;  %v545_v45 = vrot.slane %v390_v26, 1 }
  0x2b   : > { %v417_v38 = vrot.slane %v415_v34, 1  ;;  %v422_v39 = vrot.slane %v420_v35, 1  ;;  %v541_v51 = vrot.slane %v3117_v23, 1  ;;  %v542_v52 = vrot.slane %v389_v24, 1  ;;  %v262_v34 = vld [vmem:[%s3106_s8 + $0x78] sm:$0xff]  ;;  %v263_v35 = vld [vmem:[%s3106_s8 + $0x80] sm:$0xff] }
  0x2c   : > { %v406_v41 = vor.u32 %v405_v36, %v401_v29  ;;  %v546_v50 = vsel %vm540_vm1, %v544_v40, %v545_v45  ;;  %v391_v53 = vpack.c.b16 %v381_v43, %v381_v43  ;;  %v427_v54 = vshll.u32 %v3128_v42, 16 }
  0x2d   : > { %v418_v44 = vor.u32 %v417_v38, %v413_v33  ;;  %573 = vrot.lane.b32.xlu2 %v546_v50, %s4186_s14  ;;  %v293_v56 = vpack.c.bf16 %v257_v48, %v257_v48  ;;  %v547_v57 = vrot.slane %v3128_v42, 1  ;;  %v543_v60 = vsel %vm540_vm1, %v541_v51, %v542_v52 }
  0x2e   : > { %v411_v46 = vsel %vm399_vm0, %v406_v41, %v410_v37  ;;  %v548_v58 = vrot.slane %v391_v53, 1  ;;  %v425_v61 = vshrl.u32 %v3128_v42, 16  ;;  %v429_v62 = vrot.slane %v427_v54, 1 }
  0x2f   : > { %520 = vrot.lane.b32.xlu0 %v411_v46, %s4184_s10  ;;  %v3135_v49 = vsel %vm399_vm0, %v418_v44, %v422_v39  ;;  %v432_v63 = vshll.u32 %v391_v53, 16  ;;  %v294_v0 = vpack.c.bf16 %v258_v59, %v258_v59  ;;  %v345_v1 = vunpack.c.l.b16 %v292_v55  ;;  %v264_v44 = vld [vmem:[%s3106_s8 + $0x88] sm:$0x3] }
  0x30   : > { %v346_v2 = vunpack.c.l.b16 %v293_v56  ;;  %v3148_v3 = vsel %vm540_vm1, %v547_v57, %v548_v58  ;;  %v430_v4 = vor.u32 %v429_v62, %v425_v61  ;;  %v295_v16 = vpack.c.bf16 %v259_v11, %v259_v11  ;;  %v265_v57 = vld [vmem:[%s3106_s8 + $0x90] sm:$0xff]  ;;  %v266_v58 = vld [vmem:[%s3106_s8 + $0x98] sm:$0xff] }
  0x31   : > { %522 = vrot.lane.b32.xlu1 %v3135_v49, %s4184_s10  ;;  %v434_v5 = vrot.slane %v432_v63, 1  ;;  %v382_v7 = vunpack.c.l.b16 %v294_v0  ;;  %v296_v17 = vpack.c.bf16 %v260_v12, %v260_v12  ;;  %v297_v24 = vpack.c.bf16 %v261_v20, %v261_v20 }
  0x32   : > { %v3155_v6 = vpack.c.b16 %v346_v2, %v345_v1  ;;  %v347_v26 = vunpack.c.l.b16 %v295_v16  ;;  %v298_v39 = vpack.c.bf16 %v262_v34, %v262_v34  ;;  %v299_v40 = vpack.c.bf16 %v263_v35, %v263_v35  ;;  %v267_v2 = vld [vmem:[%s3106_s8 + $0xa0] sm:$0x3]  ;;  %v270_v34 = vld [vmem:[%s3106_s8 + $0xb8] sm:$0x3] }
  0x33   : > { %v3159_v9 = vsel %vm399_vm0, %v430_v4, %v434_v5  ;;  %v392_v10 = vpack.c.b16 %v382_v7, %v382_v7  ;;  %v348_v27 = vunpack.c.l.b16 %v296_v17  ;;  %v383_v31 = vunpack.c.l.b16 %v297_v24  ;;  %v2714_v24 = vld [vmem:[%s4194_s1 + $0x30] sm:$0xff] }
  0x34   : > { %v439_v8 = vshll.u32 %v3155_v6, 16  ;;  %v437_v13 = vshrl.u32 %v3155_v6, 16  ;;  %v550_v18 = vrot.slane %v3155_v6, 1  ;;  %v300_v47 = vpack.c.bf16 %v264_v44, %v264_v44 }
  0x35   : > { %598 = vrot.lane.b32.xlu2 %v3128_v42, %s2980_s9  ;;  %v444_v15 = vshll.u32 %v392_v10, 16  ;;  %v551_v19 = vrot.slane %v392_v10, 1  ;;  %v3183_v30 = vpack.c.b16 %v348_v27, %v347_v26  ;;  %v393_v33 = vpack.c.b16 %v383_v31, %v383_v31  ;;  %v2713_v26 = vld [vmem:[%s4194_s1 + $0x28] sm:$0xff] }
  0x36   : > { %v441_v14 = vrot.slane %v439_v8, 1  ;;  %v349_v48 = vunpack.c.l.b16 %v298_v39  ;;  %v384_v54 = vunpack.c.l.b16 %v300_v47  ;;  %v301_v62 = vpack.c.bf16 %v265_v57, %v265_v57 }
  0x37   : > { %571 = vrot.lane.b32.xlu0 %v543_v60, %s4186_s14  ;;  %v446_v22 = vrot.slane %v444_v15, 1  ;;  %v3173_v28 = vsel %vm540_vm1, %v550_v18, %v551_v19  ;;  %v451_v32 = vshll.u32 %v3183_v30, 16  ;;  %v449_v36 = vshrl.u32 %v3183_v30, 16  ;;  %v268_v18 = vld [vmem:[%s3106_s8 + $0xa8] sm:$0xff]  ;;  %v269_v19 = vld [vmem:[%s3106_s8 + $0xb0] sm:$0xff] }
  0x38   : > { %v442_v21 = vor.u32 %v441_v14, %v437_v13  ;;  %v456_v38 = vshll.u32 %v393_v33, 16  ;;  %v553_v41 = vrot.slane %v3183_v30, 1  ;;  %v554_v43 = vrot.slane %v393_v33, 1  ;;  %v2715_v13 = vld [vmem:[%s4194_s1 + $0x38] sm:$0xff] }
  0x39   : > { %575 = vrot.lane.b32.xlu1 %v3148_v3, %s4186_s14  ;;  %v453_v37 = vrot.slane %v451_v32, 1  ;;  %v394_v56 = vpack.c.b16 %v384_v54, %v384_v54  ;;  %v302_v63 = vpack.c.bf16 %v266_v58, %v266_v58  ;;  %v303_v7 = vpack.c.bf16 %v267_v2, %v267_v2  ;;  %1048 = vmatpush.bf16.msra.mxu0 %v2715_v13  ;;  %v272_v54 = vld [vmem:[%s3106_s8 + $0xc8] sm:$0xff]  ;;  %v2710_v58 = vld [vmem:[%s4194_s1 + $0x10] sm:$0xff] }
  0x3a   : > { %v3177_v29 = vsel %vm399_vm0, %v442_v21, %v446_v22  ;;  %v458_v46 = vrot.slane %v456_v38, 1  ;;  %v3198_v51 = vsel %vm540_vm1, %v553_v41, %v554_v43  ;;  %v351_v8 = vunpack.c.l.b16 %v301_v62  ;;  %v2712_v43 = vld [vmem:[%s4194_s1 + $0x20] sm:$0xff]  ;;  %v2722_v13 = vld [vmem:[%s4194_s1 + $0x70] sm:$0xff] }
  0x3b   : > { %v454_v45 = vor.u32 %v453_v37, %v449_v36  ;;  %v468_v61 = vshll.u32 %v394_v56, 16  ;;  %v557_v1 = vrot.slane %v394_v56, 1  ;;  %v352_v10 = vunpack.c.l.b16 %v302_v63  ;;  %v2723_v63 = vld [vmem:[%s4194_s1 + $0x78] sm:$0xff] }
  0x3c   : > { %v385_v15 = vunpack.c.l.b16 %v303_v7  ;;  %v304_v27 = vpack.c.bf16 %v268_v18, %v268_v18  ;;  %v305_v31 = vpack.c.bf16 %v269_v19, %v269_v19  ;;  %v306_v37 = vpack.c.bf16 %v270_v34, %v270_v34  ;;  %1107 = vmatpush.bf16.msra.mxu1 %v2723_v63 }
  0x3d   : > { %600 = vrot.lane.b32.xlu2 %v3155_v6, %s2980_s9  ;;  %v3203_v52 = vsel %vm399_vm0, %v454_v45, %v458_v46  ;;  %v470_v5 = vrot.slane %v468_v61, 1  ;;  %v3238_v14 = vpack.c.b16 %v352_v10, %v351_v8  ;;  %1049 = vmatpush.bf16.msra.mxu0 %v2714_v24  ;;  %v2711_v46 = vld [vmem:[%s4194_s1 + $0x18] sm:$0xff] }
  0x3e   : > { %v395_v17 = vpack.c.b16 %v385_v15, %v385_v15  ;;  %v353_v38 = vunpack.c.l.b16 %v304_v27  ;;  %v354_v39 = vunpack.c.l.b16 %v305_v31  ;;  %v386_v45 = vunpack.c.l.b16 %v306_v37  ;;  %v274_v37 = vld [vmem:[%s3106_s8 + $0xd8] sm:$0xff] }
  0x3f   : > { %524 = vrot.lane.b32.xlu0 %v3159_v9, %s4184_s10  ;;  %v475_v16 = vshll.u32 %v3238_v14, 16  ;;  %v473_v20 = vshrl.u32 %v3238_v14, 16  ;;  %v559_v32 = vrot.slane %v3238_v14, 1 }
  0x40   : > { %v480_v22 = vshll.u32 %v395_v17, 16  ;;  %v560_v33 = vrot.slane %v395_v17, 1  ;;  %v3273_v44 = vpack.c.b16 %v354_v39, %v353_v38  ;;  %1108 = vmatpush.bf16.msra.mxu1 %v2722_v13  ;;  %v275_v38 = vld [vmem:[%s3106_s8 + $0xe0] sm:$0xff] }
  0x41   : > { %659 = vrot.lane.b32.xlu1 %v3128_v42, %s4186_s14  ;;  %v477_v21 = vrot.slane %v475_v16, 1  ;;  %1050 = vmatpush.bf16.msra.mxu0 %v2713_v26  ;;  %v2708_v16 = vld [vmem:[%s4194_s1] sm:$0xff] }
  0x42   : > { %v482_v36 = vrot.slane %v480_v22, 1  ;;  %v487_v47 = vshll.u32 %v3273_v44, 16  ;;  %v562_v61 = vrot.slane %v3273_v44, 1  ;;  %v2725_v22 = vld [vmem:[%s4194_s1 + $0x88] sm:$0xff]  ;;  %v2720_v26 = vld [vmem:[%s4194_s1 + $0x60] sm:$0xff] }
  0x43   : > { %v478_v35 = vor.u32 %v477_v21, %v473_v20  ;;  %v2721_v20 = vld [vmem:[%s4194_s1 + $0x68] sm:$0xff]  ;;  %2795 = vmatpush.bf16.msra.mxu2 %v2725_v22 }
  0x44   : > { %v489_v56 = vrot.slane %v487_v47, 1  ;;  %1109 = vmatpush.bf16.msra.mxu1 %v2721_v20  ;;  %v310_v47 = vpack.c.bf16 %v274_v37, %v274_v37 }
  0x45   : > { %526 = vrot.lane.b32.xlu2 %v3177_v29, %s4184_s10  ;;  %v3264_v41 = vsel %vm399_vm0, %v478_v35, %v482_v36  ;;  %1051 = vmatpush.bf16.msra.mxu0 %v2712_v43  ;;  %v2719_v36 = vld [vmem:[%s4194_s1 + $0x58] sm:$0xff] }
  0x47   : > { %634 = vrot.lane.b32.xlu0 %v546_v50, %s4184_s10  ;;  %v350_v50 = vunpack.c.l.b16 %v299_v40  ;;  %v3259_v40 = vsel %vm540_vm1, %v559_v32, %v560_v33 }
  0x48   : > { %1110 = vmatpush.bf16.msra.mxu1 %v2720_v26  ;;  %v277_v26 = vld [vmem:[%s3106_s8 + $0xf0] sm:$0xff] }
  0x49   : > { %577 = vrot.lane.b32.xlu1 %v3173_v28, %s4186_s14  ;;  %v3209_v53 = vpack.c.b16 %v350_v50, %v349_v48  ;;  %v396_v48 = vpack.c.b16 %v386_v45, %v386_v45  ;;  %1052 = vmatpush.bf16.msra.mxu0 %v2711_v46  ;;  %v271_v50 = vld [vmem:[%s3106_s8 + $0xc0] sm:$0xff]  ;;  %v276_v45 = vld [vmem:[%s3106_s8 + $0xe8] sm:$0x3]  ;;  %v2718_v46 = vld [vmem:[%s4194_s1 + $0x50] sm:$0xff] }
  0x4b   : > { %v463_v55 = vshll.u32 %v3209_v53, 16  ;;  %v461_v59 = vshrl.u32 %v3209_v53, 16  ;;  %v556_v0 = vrot.slane %v3209_v53, 1  ;;  %v492_v57 = vshll.u32 %v396_v48, 16 }
  0x4c   : > { %v563_v62 = vrot.slane %v396_v48, 1  ;;  %1111 = vmatpush.bf16.msra.mxu1 %v2719_v36  ;;  %v311_v48 = vpack.c.bf16 %v275_v38, %v275_v38 }
  0x4d   : > { %602 = vrot.lane.b32.xlu2 %v3183_v30, %s2980_s9  ;;  %v465_v60 = vrot.slane %v463_v55, 1  ;;  %v3224_v11 = vsel %vm540_vm1, %v556_v0, %v557_v1  ;;  %v485_v55 = vshrl.u32 %v3273_v44, 16  ;;  %1053 = vmatpush.bf16.msra.mxu0 %v2710_v58  ;;  %v2709_v0 = vld [vmem:[%s4194_s1 + $0x8] sm:$0xff]  ;;  %v273_v1 = vld [vmem:[%s3106_s8 + $0xd0] sm:$0x3] }
  0x4e   : > { %v3300_v10 = vsel %vm540_vm1, %v562_v61, %v563_v62  ;;  %v2716_v62 = vld [vmem:[%s4194_s1 + $0x40] sm:$0xff] }
  0x4f   : > { %694 = vrot.lane.b32.xlu0 %v3159_v9, %s2980_s9  ;;  %v466_v4 = vor.u32 %v465_v60, %v461_v59  ;;  %v307_v59 = vpack.c.bf16 %v271_v50, %v271_v50  ;;  %v308_v60 = vpack.c.bf16 %v272_v54, %v272_v54  ;;  %v490_v2 = vor.u32 %v489_v56, %v485_v55 }
  0x50   : > { %v312_v54 = vpack.c.bf16 %v276_v45, %v276_v45  ;;  %1112 = vmatpush.bf16.msra.mxu1 %v2718_v46  ;;  %v357_v56 = vunpack.c.l.b16 %v310_v47 }
  0x51   : > { %661 = vrot.lane.b32.xlu1 %v3155_v6, %s4186_s14  ;;  %v3229_v12 = vsel %vm399_vm0, %v466_v4, %v470_v5  ;;  %v494_v4 = vrot.slane %v492_v57, 1  ;;  %1054 = vmatpush.bf16.msra.mxu0 %v2709_v0  ;;  %v309_v5 = vpack.c.bf16 %v273_v1, %v273_v1  ;;  %v355_v7 = vunpack.c.l.b16 %v307_v59 }
  0x52   : > { %v356_v8 = vunpack.c.l.b16 %v308_v60  ;;  %v358_v57 = vunpack.c.l.b16 %v311_v48  ;;  %v388_v58 = vunpack.c.l.b16 %v312_v54  ;;  %v2717_v60 = vld [vmem:[%s4194_s1 + $0x48] sm:$0xff]  ;;  %v279_v48 = vld [vmem:[%s3106_s8 + $0x100] sm:$0x3] }
  0x53   : > { %v3308_v15 = vsel %vm399_vm0, %v490_v2, %v494_v4  ;;  %v387_v18 = vunpack.c.l.b16 %v309_v5  ;;  %v315_v54 = vpack.c.bf16 %v279_v48, %v279_v48 }
  0x54   : > { %v3317_v17 = vpack.c.b16 %v356_v8, %v355_v7  ;;  %1113 = vmatpush.bf16.msra.mxu1 %v2717_v60  ;;  %v3370_v63 = vpack.c.b16 %v358_v57, %v357_v56  ;;  %v398_v0 = vpack.c.b16 %v388_v58, %v388_v58  ;;  %v280_v58 = vld [vmem:[%s3106_s8 + $0x108] sm:$0xff]  ;;  %v281_v60 = vld [vmem:[%s3106_s8 + $0x110] sm:$0xff] }
  0x55   : > { %528 = vrot.lane.b32.xlu2 %v3203_v52, %s4184_s10  ;;  %1055 = vmatpush.bf16.msra.mxu0 %v2708_v16  ;;  %v397_v24 = vpack.c.b16 %v387_v18, %v387_v18 }
  0x56   : > { %v499_v21 = vshll.u32 %v3317_v17, 16  ;;  %v497_v27 = vshrl.u32 %v3317_v17, 16  ;;  %v565_v33 = vrot.slane %v3317_v17, 1  ;;  %v511_v1 = vshll.u32 %v3370_v63, 16 }
  0x57   : > { %636 = vrot.lane.b32.xlu0 %v3148_v3, %s4184_s10  ;;  %v504_v32 = vshll.u32 %v397_v24, 16  ;;  %v566_v34 = vrot.slane %v397_v24, 1  ;;  %v568_v4 = vrot.slane %v3370_v63, 1  ;;  %v569_v5 = vrot.slane %v398_v0, 1 }
  0x58   : > { %v501_v31 = vrot.slane %v499_v21, 1  ;;  %1114 = vmatpush.bf16.msra.mxu1 %v2716_v62  ;;  %v509_v8 = vshrl.u32 %v3370_v63, 16  ;;  %v513_v13 = vrot.slane %v511_v1, 1  ;;  %v516_v16 = vshll.u32 %v398_v0, 16 }
  0x59   : > { %579 = vrot.lane.b32.xlu1 %v3198_v51, %s4186_s14  ;;  %1172 = vmatpush.bf16.msrb.mxu0 %v2725_v22  ;;  %v506_v43 = vrot.slane %v504_v32, 1  ;;  %v3351_v50 = vsel %vm540_vm1, %v565_v33, %v566_v34  ;;  %v3384_v22 = vsel %vm540_vm1, %v568_v4, %v569_v5  ;;  %v617_v62 = vunpack.c.l.b16 %v315_v54  ;;  %v2724_v54 = vld [vmem:[%s4194_s1 + $0x80] sm:$0xff]  ;;  %s2726_s1 = sshll.u32 %s1328_s0, 3 }
  0x5a   : > { %v502_v39 = vor.u32 %v501_v31, %v497_v27  ;;  %v514_v20 = vor.u32 %v513_v13, %v509_v8  ;;  %v518_v21 = vrot.slane %v516_v16, 1  ;;  %v278_v27 = vld [vmem:[%s3106_s8 + $0xf8] sm:$0xff]  ;;  %v313_v31 = vpack.c.bf16 %v277_v26, %v277_v26  ;;  %2796 = vmatpush.bf16.msra.mxu2 %v2724_v54 }
  0x5b   : > { %v314_v32 = vpack.c.bf16 %v278_v27, %v278_v27  ;;  %v316_v0 = vpack.c.bf16 %v280_v58, %v280_v58  ;;  %v317_v1 = vpack.c.bf16 %v281_v60, %v281_v60 }
  0x5c   : > { %v3356_v55 = vsel %vm399_vm0, %v502_v39, %v506_v43  ;;  %v3387_v24 = vsel %vm399_vm0, %v514_v20, %v518_v21  ;;  %v593_v37 = vunpack.c.l.b16 %v313_v31 }
  0x5d   : > { %604 = vrot.lane.b32.xlu2 %v3209_v53, %s2980_s9  ;;  %v594_v38 = vunpack.c.l.b16 %v314_v32  ;;  %v657_v8 = vunpack.c.l.b16 %v317_v1  ;;  %1173 = vmatpush.bf16.msrb.mxu0 %v2724_v54 }
  0x5e   : > { %2588 = vmatmul.msk.bf16.vlgmr.msra.gmra.mxu2 %vm717_vm2, %v3224_v11 }
  0x5f   : > { %696 = vrot.lane.b32.xlu0 %v3177_v29, %s2980_s9  ;;  %v595_v46 = vpack.c.b16 %v594_v38, %v593_v37 }
  0x61   : > { %663 = vrot.lane.b32.xlu1 %v3183_v30, %s4186_s14  ;;  %v631_v21 = vrot.slane %v595_v46, 1  ;;  %v622_v27 = vshll.u32 %v595_v46, 16  ;;  %v620_v31 = vshrl.u32 %v595_v46, 16 }
  0x63   : > { %v624_v32 = vrot.slane %v622_v27, 1 }
  0x65   : > { %530 = vrot.lane.b32.xlu2 %v3229_v12, %s4184_s10  ;;  %v625_v38 = vor.u32 %v624_v32, %v620_v31 }
  0x67   : > { %638 = vrot.lane.b32.xlu0 %v3173_v28, %s4184_s10 }
  0x69   : > { %581 = vrot.lane.b32.xlu1 %v3224_v11, %s4186_s14 }
  0x6d   : > { %606 = vrot.lane.b32.xlu2 %v3238_v14, %s2980_s9 }
  0x6e   : > { %2589 = vmatmul.msk.bf16.gmra.mxu2 %vm717_vm2, %v3259_v40 }
  0x6f   : > { %698 = vrot.lane.b32.xlu0 %v3203_v52, %s2980_s9 }
  0x71   : > { %665 = vrot.lane.b32.xlu1 %v3209_v53, %s4186_s14 }
  0x75   : > { %532 = vrot.lane.b32.xlu2 %v3264_v41, %s4184_s10 }
  0x77   : > { %640 = vrot.lane.b32.xlu0 %v3198_v51, %s4184_s10  ;;  %s1333_s10 = ssub.s32 %s4218_s30, %s4214_s16 }
  0x79   : > { %583 = vrot.lane.b32.xlu1 %v3259_v40, %s4186_s14 }
  0x7d   : > { %608 = vrot.lane.b32.xlu2 %v3273_v44, %s2980_s9 }
  0x7e   : > { %2590 = vmatmul.msk.bf16.gmra.mxu2 %vm717_vm2, %v3300_v10 }
  0x7f   : > { %700 = vrot.lane.b32.xlu0 %v3229_v12, %s2980_s9 }
  0x81   : > { %667 = vrot.lane.b32.xlu1 %v3238_v14, %s4186_s14 }
  0x85   : > { %534 = vrot.lane.b32.xlu2 %v3308_v15, %s4195_s15 }
  0x87   : > { %642 = vrot.lane.b32.xlu0 %v3224_v11, %s4195_s15  ;;  %v3319_v19 = vpop.permute.xlu2 %573 }
  0x89   : > { %585 = vrot.lane.b32.xlu1 %v3300_v10, %s4186_s14 }
  0x8d   : > { %610 = vrot.lane.b32.xlu2 %v3317_v17, %s2980_s9 }
  0x8e   : > { %2591 = vmatmul.msk.bf16.gmra.mxu2 %vm717_vm2, %v3351_v50 }
  0x8f   : > { %702 = vrot.lane.b32.xlu0 %v3264_v41, %s2980_s9  ;;  %v3339_v35 = vpop.permute.xlu2 %598 }
  0x91   : > { %669 = vrot.lane.b32.xlu1 %v3273_v44, %s4196_s17 }
  0x95   : > { %536 = vrot.lane.b32.xlu2 %v3356_v55, %s4195_s15 }
  0x97   : > { %644 = vrot.lane.b32.xlu0 %v3259_v40, %s4195_s15  ;;  %v3362_v59 = vpop.permute.xlu2 %600 }
  0x99   : > { %587 = vrot.lane.b32.xlu1 %v3351_v50, %s4196_s17 }
  0x9b   : > { %v597_v61 = vpop.permute.xlu1 %596 }
  0x9d   : > { %612 = vrot.lane.b32.xlu2 %v3370_v63, %s2980_s9 }
  0x9e   : > { %2592 = vmatmul.msk.bf16.gmra.mxu2 %vm717_vm2, %v3384_v22 }
  0x9f   : > { %704 = vrot.lane.b32.xlu0 %v3308_v15, %s2980_s9  ;;  %v3380_v7 = vpop.permute.xlu2 %526 }
  0xa0   : > { %v725_v11 = vsel %vm717_vm2, %v3155_v6, %v3380_v7 }
  0xa1   : > { %v521_v2 = vpop.permute.xlu0 %520  ;;  %671 = vrot.lane.b32.xlu1 %v3317_v17, %s4196_s17 }
  0xa2   : > { %v719_v33 = vsel %vm717_vm2, %v3117_v23, %v521_v2 }
  0xa3   : > { %v523_v18 = vpop.permute.xlu1 %522 }
  0xa4   : > { %v721_v56 = vsel %vm717_vm2, %v3119_v25, %v523_v18  ;;  %v656_v25 = vunpack.c.l.b16 %v316_v0 }
  0xa5   : > { %538 = vrot.lane.b32.xlu2 %v3387_v24, %s4195_s15 }
  0xa6   : > { %v3426_v16 = vpack.c.b16 %v657_v8, %v656_v25 }
  0xa7   : > { %646 = vrot.lane.b32.xlu0 %v3300_v10, %s4195_s15  ;;  %v3401_v45 = vpop.permute.xlu2 %602 }
  0xa8   : > { %v685_v0 = vshll.u32 %v3426_v16, 16  ;;  %v683_v25 = vshrl.u32 %v3426_v16, 16 }
  0xa9   : > { %v572_v34 = vpop.permute.xlu0 %571  ;;  %589 = vrot.lane.b32.xlu1 %v3384_v22, %s4196_s17 }
  0xaa   : > { %v740_v36 = vsel %vm738_vm3, %v719_v33, %v572_v34 }
  0xab   : > { %v761_v39 = vsel %vm759_vm4, %v740_v36, %v597_v61  ;;  %v576_v43 = vpop.permute.xlu1 %575  ;;  %v742_v61 = vsel %vm738_vm3, %v721_v56, %v3319_v19  ;;  %v618_v19 = vpack.c.b16 %v617_v62, %v617_v62 }
  0xac   : > { %1056 = vmatmul.bf16.vlgmr.msra.gmra.mxu0 %v761_v39  ;;  %v764_v4 = vsel %vm759_vm4, %v742_v61, %v3339_v35 }
  0xad   : > { %614 = vrot.lane.b32.xlu2 %v595_v46, %s2980_s9  ;;  %v632_v26 = vrot.slane %v618_v19, 1  ;;  %v627_v33 = vshll.u32 %v618_v19, 16 }
  0xaf   : > { %706 = vrot.lane.b32.xlu0 %v3356_v55, %s2980_s9  ;;  %v3411_v57 = vpop.permute.xlu2 %528  ;;  %v3439_v37 = vsel %vm540_vm1, %v631_v21, %v632_v26  ;;  %v629_v39 = vrot.slane %v627_v33, 1 }
  0xb0   : > { %2593 = vmatmul.msk.bf16.gmra.mxu2 %vm717_vm2, %v3439_v37 }
  0xb1   : > { %v525_v23 = vpop.permute.xlu0 %524  ;;  %673 = vrot.lane.b32.xlu1 %v3370_v63, %s4196_s17  ;;  %v3443_v48 = vsel %vm399_vm0, %v625_v38, %v629_v39 }
  0xb2   : > { %v723_v34 = vsel %vm717_vm2, %v3128_v42, %v525_v23 }
  0xb3   : > { %v660_v47 = vpop.permute.xlu1 %659 }
  0xb5   : > { %708 = vrot.lane.b32.xlu2 %v3387_v24, %s2980_s9 }
  0xb7   : > { %648 = vrot.lane.b32.xlu0 %v3351_v50, %s4195_s15  ;;  %v3431_v20 = vpop.permute.xlu2 %604 }
  0xb9   : > { %v635_v2 = vpop.permute.xlu0 %634  ;;  %675 = vrot.lane.b32.xlu1 %v595_v46, %s4196_s17 }
  0xba   : > { %v792_v13 = vsel %vm717_vm2, %v3135_v49, %v635_v2 }
  0xbb   : > { %v578_v5 = vpop.permute.xlu1 %577  ;;  %v821_v18 = vsel %vm738_vm3, %v792_v13, %v660_v47  ;;  %v744_v47 = vsel %vm738_vm3, %v723_v34, %v576_v43  ;;  %v282_v43 = vld [vmem:[%s3106_s8 + $0x118] sm:$0x3]  ;;  %s1329_s8 = ssub.s32 %s3088_s12, %s4214_s16  ;;  %s1336_s16 = scalar_lea.vmem [#allocation2], %s2726_s1 }
  0xbc   : > { %1061 = vmatmul.bf16.gmra.mxu0 %v764_v4  ;;  %v767_v42 = vsel %vm759_vm4, %v744_v47, %v3362_v59  ;;  %v318_v60 = vpack.c.bf16 %v282_v43, %v282_v43  ;;  %v746_v26 = vsel %vm738_vm3, %v725_v11, %v578_v5  ;;  %s2727_s14 = sshll.u32 %s1329_s8, 3  ;;  %s2682_s12 = smul.u32 192, %s2962_s21 }
  0xbd   : > { %710 = vrot.lane.b32.xlu2 %v3443_v48, %s2980_s9  ;;  %s3623_s26 = scalar_lea.vmem [#allocation2], %s2727_s14  ;;  %s2702_s1 = sshll.u32 %s2966_s22, 5 }
  0xbe   : > { %v680_v61 = vunpack.c.l.b16 %v318_v60 }
  0xbf   : > { %650 = vrot.lane.b32.xlu0 %v3384_v22, %s4195_s15  ;;  %v531_v23 = vpop.permute.xlu2 %530 }
  0xc0   : > { %v3460_v59 = vpack.c.b16 %v680_v61, %v680_v61  ;;  %v729_v54 = vsel %vm717_vm2, %v3209_v53, %v531_v23 }
  0xc1   : > { %v695_v35 = vpop.permute.xlu0 %694  ;;  %677 = vrot.lane.b32.xlu1 %v3426_v16, %s4196_s17 }
  0xc2   : > { %v841_v49 = vsel %vm759_vm4, %v821_v18, %v695_v35  ;;  %v690_v4 = vshll.u32 %v3460_v59, 16  ;;  %v770_v35 = vsel %vm759_vm4, %v746_v26, %v3401_v45  ;;  %v727_v45 = vsel %vm717_vm2, %v3183_v30, %v3411_v57 }
  0xc3   : > { %1115 = vmatmul.bf16.vlgmr.msra.gmra.mxu1 %v841_v49  ;;  %v662_v36 = vpop.permute.xlu1 %661 }
  0xc4   : > { %v692_v18 = vrot.slane %v690_v4, 1 }
  0xc7   : > { %652 = vrot.lane.b32.xlu0 %v3439_v37, %s4195_s15  ;;  %v607_v13 = vpop.permute.xlu2 %606  ;;  %v714_v37 = vrot.slane %v3426_v16, 1 }
  0xc9   : > { %v637_v46 = vpop.permute.xlu0 %636 }
  0xca   : > { %v795_v58 = vsel %vm717_vm2, %v3159_v9, %v637_v46  ;;  %v687_v9 = vrot.slane %v685_v0, 1 }
  0xcb   : > { %v580_v56 = vpop.permute.xlu1 %579  ;;  %v823_v62 = vsel %vm738_vm3, %v795_v58, %v662_v36 }
  0xcc   : > { %1066 = vmatmul.bf16.gmra.mxu0 %v767_v42  ;;  %v688_v19 = vor.u32 %v687_v9, %v683_v25  ;;  %v748_v36 = vsel %vm738_vm3, %v727_v45, %v580_v56  ;;  %v715_v45 = vrot.slane %v3460_v59, 1 }
  0xcd   : > { %v773_v38 = vsel %vm759_vm4, %v748_v36, %v3431_v20 }
  0xce   : > { %v693_v21 = vsel %vm399_vm0, %v688_v19, %v692_v18 }
  0xcf   : > { %712 = vrot.lane.b32.xlu2 %v693_v21, %s2980_s9  ;;  %v533_v32 = vpop.permute.xlu2 %532 }
  0xd0   : > { %v731_v23 = vsel %vm717_vm2, %v3238_v14, %v533_v32 }
  0xd1   : > { %v697_v1 = vpop.permute.xlu0 %696 }
  0xd2   : > { %v844_v2 = vsel %vm759_vm4, %v823_v62, %v697_v1 }
  0xd3   : > { %1120 = vmatmul.bf16.gmra.mxu1 %v844_v2  ;;  %v664_v8 = vpop.permute.xlu1 %663 }
  0xd7   : > { %v609_v34 = vpop.permute.xlu2 %608 }
  0xd9   : > { %v639_v27 = vpop.permute.xlu0 %638 }
  0xda   : > { %v798_v31 = vsel %vm717_vm2, %v3177_v29, %v639_v27 }
  0xdb   : > { %v582_v49 = vpop.permute.xlu1 %581  ;;  %v825_v33 = vsel %vm738_vm3, %v798_v31, %v664_v8 }
  0xdc   : > { %1071 = vmatmul.bf16.gmra.mxu0 %v770_v35  ;;  %v750_v20 = vsel %vm738_vm3, %v729_v54, %v582_v49 }
  0xdf   : > { %v535_v42 = vpop.permute.xlu2 %534 }
  0xe1   : > { %v699_v6 = vpop.permute.xlu0 %698 }
  0xe2   : > { %v847_v7 = vsel %vm759_vm4, %v825_v33, %v699_v6 }
  0xe3   : > { %1125 = vmatmul.bf16.gmra.mxu1 %v847_v7  ;;  %v666_v5 = vpop.permute.xlu1 %665 }
  0xe7   : > { %v611_v58 = vpop.permute.xlu2 %610 }
  0xe9   : > { %v641_v29 = vpop.permute.xlu0 %640 }
  0xea   : > { %v801_v40 = vsel %vm717_vm2, %v3203_v52, %v641_v29  ;;  %v776_v52 = vsel %vm759_vm4, %v750_v20, %v607_v13  ;;  %v733_v13 = vsel %vm717_vm2, %v3273_v44, %v535_v42 }
  0xeb   : > { %v584_v39 = vpop.permute.xlu1 %583  ;;  %v827_v47 = vsel %vm738_vm3, %v801_v40, %v666_v5 }
  0xec   : > { %1076 = vmatmul.bf16.gmra.mxu0 %v773_v38  ;;  %v752_v1 = vsel %vm738_vm3, %v731_v23, %v584_v39 }
  0xef   : > { %v537_v0 = vpop.permute.xlu2 %536 }
  0xf0   : > { %v735_v31 = vsel %vm717_vm2, %v3317_v17, %v537_v0  ;;  %v716_v17 = vsel %vm540_vm1, %v714_v37, %v715_v45 }
  0xf1   : > { %v701_v46 = vpop.permute.xlu0 %700  ;;  %2594 = vmatmul.msk.bf16.gmra.mxu2 %vm717_vm2, %v716_v17 }
  0xf2   : > { %v850_v30 = vsel %vm759_vm4, %v827_v47, %v701_v46  ;;  %v3542_v46 = vld [vmem:[%s4197_s2] ss:$0 sm:$0xff]  ;;  %s2728_s2 = sshll.u32 %s1333_s10, 3 }
  0xf3   : > { %1130 = vmatmul.bf16.gmra.mxu1 %v850_v30  ;;  %v668_v57 = vpop.permute.xlu1 %667  ;;  %s1360_s30 = scalar_lea.vmem [#allocation2], %s2728_s2 }
  0xf7   : > { %v613_v4 = vpop.permute.xlu2 %612 }
  0xf9   : > { %v643_v56 = vpop.permute.xlu0 %642 }
  0xfa   : > { %v804_v60 = vsel %vm717_vm2, %v3229_v12, %v643_v56  ;;  %v779_v12 = vsel %vm759_vm4, %v752_v1, %v609_v34 }
  0xfb   : > { %v586_v43 = vpop.permute.xlu1 %585  ;;  %v829_v10 = vsel %vm738_vm3, %v804_v60, %v668_v57 }
  0xfc   : > { %1081 = vmatmul.bf16.gmra.mxu0 %v776_v52  ;;  %v754_v18 = vsel %vm738_vm3, %v733_v13, %v586_v43 }
  0xfd   : > { %v782_v21 = vsel %vm759_vm4, %v754_v18, %v611_v58 }
 0x101   : > { %v703_v61 = vpop.permute.xlu0 %702 }
 0x102   : > { %v853_v62 = vsel %vm759_vm4, %v829_v10, %v703_v61 }
 0x103   : > { %1135 = vmatmul.bf16.gmra.mxu1 %v853_v62  ;;  %v670_v53 = vpop.permute.xlu1 %669 }
 0x109   : > { %v645_v2 = vpop.permute.xlu0 %644 }
 0x10a   : > { %v807_v25 = vsel %vm717_vm2, %v3264_v41, %v645_v2  ;;  %v539_v41 = vpop.permute.xlu2 %538 }
 0x10b   : > { %v588_v9 = vpop.permute.xlu1 %587  ;;  %v831_v50 = vsel %vm738_vm3, %v807_v25, %v670_v53 }
 0x10c   : > { %1086 = vmatmul.bf16.gmra.mxu0 %v779_v12  ;;  %v756_v32 = vsel %vm738_vm3, %v735_v31, %v588_v9  ;;  %v1190_v9 = vpop.f32.mrf.mxu2 }
 0x10d   : > { %v785_v5 = vsel %vm759_vm4, %v756_v32, %v613_v4 }
 0x111   : > { %v705_v8 = vpop.permute.xlu0 %704 }
 0x112   : > { %v856_v14 = vsel %vm759_vm4, %v831_v50, %v705_v8  ;;  %v615_v49 = vpop.permute.xlu2 %614 }
 0x113   : > { %1140 = vmatmul.bf16.gmra.mxu1 %v856_v14  ;;  %v672_v19 = vpop.permute.xlu1 %671 }
 0x114   : > { %v1192_v13 = vpop.f32.mrf.mxu2 }
 0x119   : > { %v647_v11 = vpop.permute.xlu0 %646 }
 0x11a   : > { %v810_v26 = vsel %vm717_vm2, %v3308_v15, %v647_v11  ;;  %v709_v36 = vpop.permute.xlu2 %708 }
 0x11b   : > { %v833_v22 = vsel %vm738_vm3, %v810_v26, %v672_v19  ;;  %v590_v27 = vpop.permute.xlu1 %589 }
 0x11c   : > { %1091 = vmatmul.bf16.gmra.mxu0 %v782_v21 }
 0x121   : > { %v707_v35 = vpop.permute.xlu0 %706 }
 0x122   : > { %v859_v44 = vsel %vm759_vm4, %v833_v22, %v707_v35  ;;  %v711_v57 = vpop.permute.xlu2 %710  ;;  %v1195_v22 = vpop.f32.mrf.mxu2 }
 0x123   : > { %1145 = vmatmul.bf16.gmra.mxu1 %v859_v44  ;;  %v674_v7 = vpop.permute.xlu1 %673 }
 0x129   : > { %v1057_v33 = vpop.f32.mrf.mxu0  ;;  %v649_v6 = vpop.permute.xlu0 %648 }
 0x12a   : > { %v813_v15 = vsel %vm717_vm2, %v3356_v55, %v649_v6  ;;  %v737_v55 = vsel %vm717_vm2, %v3370_v63, %v539_v41  ;;  %v1058_v63 = vadd.f32 %v3542_v46, %v1057_v33  ;;  %v713_v23 = vpop.permute.xlu2 %712  ;;  %v1197_v31 = vpop.f32.mrf.mxu2 }
 0x12b   : > { %v835_v34 = vsel %vm738_vm3, %v813_v15, %v674_v7  ;;  %v758_v40 = vsel %vm738_vm3, %v737_v55, %v590_v27  ;;  %v676_v47 = vpop.permute.xlu1 %675 }
 0x12c   : > { %1096 = vmatmul.bf16.gmra.mxu0 %v785_v5  ;;  %v862_v29 = vsel %vm759_vm4, %v835_v34, %v709_v36  ;;  %v788_v42 = vsel %vm759_vm4, %v758_v40, %v615_v49 }
 0x131   : > { %v1059_v38 = vpop.f32.mrf.mxu0  ;;  %v651_v39 = vpop.permute.xlu0 %650 }
 0x132   : > { %v816_v59 = vsel %vm717_vm2, %v3387_v24, %v651_v39  ;;  %v1060_v52 = vadd.f32 %v3542_v46, %v1059_v38  ;;  %v1200_v34 = vpop.f32.mrf.mxu2 }
 0x133   : > { %1150 = vmatmul.bf16.gmra.mxu1 %v862_v29  ;;  %v837_v30 = vsel %vm738_vm3, %v816_v59, %v676_v47  ;;  %v678_v62 = vpop.permute.xlu1 %677 }
 0x134   : > { %v865_v20 = vsel %vm759_vm4, %v837_v30, %v711_v57 }
 0x139   : > { %v1062_v16 = vpop.f32.mrf.mxu0  ;;  %v653_v43 = vpop.permute.xlu0 %652 }
 0x13a   : > { %v819_v61 = vsel %vm717_vm2, %v3443_v48, %v653_v43  ;;  %v1063_v0 = vadd.f32 %v3542_v46, %v1062_v16  ;;  %v1202_v57 = vpop.f32.mrf.mxu2 }
 0x13b   : > { %v839_v53 = vsel %vm738_vm3, %v819_v61, %v678_v62 }
 0x13c   : > { %1101 = vmatmul.bf16.gmra.mxu0 %v788_v42  ;;  %v868_v2 = vsel %vm759_vm4, %v839_v53, %v713_v23 }
 0x140   : > { %v1116_v54 = vpop.f32.mrf.mxu1 }
 0x141   : > { %v3548_v56 = vadd.f32 %v1116_v54, %v1058_v63  ;;  %v1064_v24 = vpop.f32.mrf.mxu0 }
 0x142   : > { %v1065_v50 = vadd.f32 %v3542_v46, %v1064_v24  ;;  %v1205_v53 = vpop.f32.mrf.mxu2 }
 0x143   : > { %1155 = vmatmul.bf16.gmra.mxu1 %v865_v20 }
 0x148   : > { %v1118_v58 = vpop.f32.mrf.mxu1 }
 0x149   : > { %v3551_v60 = vadd.f32 %v1118_v58, %v1060_v52  ;;  %v1067_v10 = vpop.f32.mrf.mxu0 }
 0x14c   : > { %2585 = vmatmul.msk.bf16.vlgmr.msrb.gmra.mxu0 %vm717_vm2, %v3148_v3  ;;  %v1068_v3 = vadd.f32 %v3542_v46, %v1067_v10 }
 0x150   : > { %v1121_v1 = vpop.f32.mrf.mxu1 }
 0x151   : > { %v3560_v12 = vadd.f32 %v1121_v1, %v1063_v0  ;;  %v1069_v25 = vpop.f32.mrf.mxu0 }
 0x152   : > { %v1070_v11 = vadd.f32 %v3542_v46, %v1069_v25 }
 0x153   : > { %1160 = vmatmul.bf16.gmra.mxu1 %v868_v2 }
 0x158   : > { %v1123_v48 = vpop.f32.mrf.mxu1 }
 0x159   : > { %v3563_v4 = vadd.f32 %v1123_v48, %v1065_v50  ;;  %v1072_v8 = vpop.f32.mrf.mxu0 }
 0x15a   : > { %v1073_v27 = vadd.f32 %v3542_v46, %v1072_v8 }
 0x15c   : > { %2586 = vmatmul.msk.bf16.gmra.mxu0 %vm717_vm2, %v3173_v28 }
 0x160   : > { %v1126_v14 = vpop.f32.mrf.mxu1 }
 0x161   : > { %v3568_v19 = vadd.f32 %v1126_v14, %v1068_v3  ;;  %v1074_v18 = vpop.f32.mrf.mxu0  ;;  %v1207_v3 = vpop.f32.mrf.mxu2 }
 0x162   : > { %v1075_v33 = vadd.f32 %v3542_v46, %v1074_v18 }
 0x168   : > { %v1128_v41 = vpop.f32.mrf.mxu1 }
 0x169   : > { %v3571_v21 = vadd.f32 %v1128_v41, %v1070_v11  ;;  %v1077_v26 = vpop.f32.mrf.mxu0 }
 0x16a   : > { %v1078_v36 = vadd.f32 %v3542_v46, %v1077_v26 }
 0x16c   : > { %2587 = vmatmul.msk.bf16.gmra.mxu0 %vm717_vm2, %v3198_v51 }
 0x170   : > { %v1131_v28 = vpop.f32.mrf.mxu1 }
 0x171   : > { %v1132_v35 = vadd.f32 %v1131_v28, %v1073_v27  ;;  %v1079_v44 = vpop.f32.mrf.mxu0 }
 0x172   : > { %v1080_v59 = vadd.f32 %v3542_v46, %v1079_v44 }
 0x173   : > { %v1191_v49 = vadd.f32 %v1190_v9, %v1132_v35  ;;  %v1210_v35 = vpop.f32.mrf.mxu2 }
 0x175   : > { %vm1231_vm5 = vcmp.ge.f32.partialorder %v1191_v49, 0.0  ;;  %v1251_v32 = vmul.f32 0.2, %v1191_v49 }
 0x177   : > { %v1271_v6 = vsel %vm1231_vm5, %v1191_v49, %v1251_v32 }
 0x178   : > { %v1291_v15 = vpack.c.bf16 %v1271_v6, %v1271_v6  ;;  %v1133_v7 = vpop.f32.mrf.mxu1 }
 0x179   : > { %v1134_v5 = vadd.f32 %v1133_v7, %v1075_v33  ;;  %v1082_v37 = vpop.f32.mrf.mxu0 }
 0x17a   : > { %1312 = vst.msk [vmem:[#allocation2 + $0x18] sm:$0xf] %vm1305_vm6, %v1291_v15  ;;  %v1083_v52 = vadd.f32 %v3542_v46, %v1082_v37 }
 0x17b   : > { %v1193_v51 = vadd.f32 %v1192_v13, %v1134_v5 }
 0x17d   : > { %vm1232_vm7 = vcmp.ge.f32.partialorder %v1193_v51, 0.0  ;;  %v1252_v45 = vmul.f32 0.2, %v1193_v51 }
 0x17f   : > { %v1272_v17 = vsel %vm1232_vm7, %v1193_v51, %v1252_v45 }
 0x180   : > { %v1292_v29 = vpack.c.bf16 %v1272_v17, %v1272_v17  ;;  %v1136_v38 = vpop.f32.mrf.mxu1 }
 0x181   : > { %v1137_v55 = vadd.f32 %v1136_v38, %v1078_v36  ;;  %v1084_v39 = vpop.f32.mrf.mxu0 }
 0x182   : > { %1313 = vst.msk [vmem:[#allocation2 + $0x1c] sm:$0xf] %vm1305_vm6, %v1292_v29  ;;  %v1085_v1 = vadd.f32 %v3542_v46, %v1084_v39 }
 0x183   : > { %v1196_v40 = vadd.f32 %v1195_v22, %v1137_v55 }
 0x185   : > { %vm1233_vm8 = vcmp.ge.f32.partialorder %v1196_v40, 0.0  ;;  %v1253_v16 = vmul.f32 0.2, %v1196_v40 }
 0x187   : > { %v1273_v47 = vsel %vm1233_vm8, %v1196_v40, %v1253_v16 }
 0x188   : > { %v1293_v42 = vpack.c.bf16 %v1273_v47, %v1273_v47  ;;  %v1138_v30 = vpop.f32.mrf.mxu1 }
 0x189   : > { %v1139_v63 = vadd.f32 %v1138_v30, %v1080_v59  ;;  %v1087_v54 = vpop.f32.mrf.mxu0 }
 0x18a   : > { %1314 = vst.msk [vmem:[#allocation2 + $0x20] sm:$0xf] %vm1305_vm6, %v1293_v42  ;;  %v1088_v13 = vadd.f32 %v3542_v46, %v1087_v54 }
 0x18b   : > { %v1198_v20 = vadd.f32 %v1197_v31, %v1139_v63 }
 0x18d   : > { %vm1234_vm9 = vcmp.ge.f32.partialorder %v1198_v20, 0.0  ;;  %v1254_v24 = vmul.f32 0.2, %v1198_v20 }
 0x18f   : > { %v1274_v43 = vsel %vm1234_vm9, %v1198_v20, %v1254_v24 }
 0x190   : > { %v1294_v58 = vpack.c.bf16 %v1274_v43, %v1274_v43  ;;  %v1141_v10 = vpop.f32.mrf.mxu1 }
 0x191   : > { %v1142_v61 = vadd.f32 %v1141_v10, %v1083_v52  ;;  %v1089_v62 = vpop.f32.mrf.mxu0 }
 0x192   : > { %1315 = vst.msk [vmem:[#allocation2 + $0x24] sm:$0xf] %vm1305_vm6, %v1294_v58  ;;  %v1090_v44 = vadd.f32 %v3542_v46, %v1089_v62 }
 0x193   : > { %v1201_v23 = vadd.f32 %v1200_v34, %v1142_v61  ;;  %v1212_v34 = vpop.f32.mrf.mxu2 }
 0x195   : > { %vm1235_vm10 = vcmp.ge.f32.partialorder %v1201_v23, 0.0  ;;  %v1255_v0 = vmul.f32 0.2, %v1201_v23 }
 0x197   : > { %v1275_v2 = vsel %vm1235_vm10, %v1201_v23, %v1255_v0 }
 0x198   : > { %v1295_v25 = vpack.c.bf16 %v1275_v2, %v1275_v2  ;;  %v1143_v9 = vpop.f32.mrf.mxu1 }
 0x199   : > { %v1144_v50 = vadd.f32 %v1143_v9, %v1085_v1  ;;  %v1092_v48 = vpop.f32.mrf.mxu0 }
 0x19a   : > { %1316 = vst.msk [vmem:[#allocation2 + $0x28] sm:$0xf] %vm1305_vm6, %v1295_v25  ;;  %v1093_v5 = vadd.f32 %v3542_v46, %v1092_v48 }
 0x19b   : > { %v1203_v8 = vadd.f32 %v1202_v57, %v1144_v50  ;;  %v1215_v42 = vpop.f32.mrf.mxu2 }
 0x19d   : > { %vm1236_vm11 = vcmp.ge.f32.partialorder %v1203_v8, 0.0  ;;  %v1256_v14 = vmul.f32 0.2, %v1203_v8 }
 0x19f   : > { %v1276_v18 = vsel %vm1236_vm11, %v1203_v8, %v1256_v14 }
 0x1a0   : > { %v1296_v11 = vpack.c.bf16 %v1276_v18, %v1276_v18  ;;  %v1146_v41 = vpop.f32.mrf.mxu1 }
 0x1a1   : > { %v1147_v26 = vadd.f32 %v1146_v41, %v1088_v13  ;;  %v1094_v22 = vpop.f32.mrf.mxu0 }
 0x1a2   : > { %1317 = vst.msk [vmem:[#allocation2 + $0x2c] sm:$0xf] %vm1305_vm6, %v1296_v11  ;;  %v1095_v55 = vadd.f32 %v3542_v46, %v1094_v22 }
 0x1a3   : > { %v1206_v27 = vadd.f32 %v1205_v53, %v1147_v26  ;;  %v1217_v10 = vpop.f32.mrf.mxu2 }
 0x1a5   : > { %vm1237_vm12 = vcmp.ge.f32.partialorder %v1206_v27, 0.0  ;;  %v1257_v28 = vmul.f32 0.2, %v1206_v27 }
 0x1a7   : > { %v1277_v49 = vsel %vm1237_vm12, %v1206_v27, %v1257_v28 }
 0x1a8   : > { %v1297_v31 = vpack.c.bf16 %v1277_v49, %v1277_v49  ;;  %v1148_v32 = vpop.f32.mrf.mxu1 }
 0x1a9   : > { %v1149_v33 = vadd.f32 %v1148_v32, %v1090_v44  ;;  %v1097_v6 = vpop.f32.mrf.mxu0 }
 0x1aa   : > { %1318 = vst.msk [vmem:[#allocation2 + $0x30] sm:$0xf] %vm1305_vm6, %v1297_v31  ;;  %v1098_v63 = vadd.f32 %v3542_v46, %v1097_v6 }
 0x1ab   : > { %v1208_v15 = vadd.f32 %v1207_v3, %v1149_v33  ;;  %v1220_v3 = vpop.f32.mrf.mxu2 }
 0x1ad   : > { %vm1238_vm13 = vcmp.ge.f32.partialorder %v1208_v15, 0.0  ;;  %v1258_v7 = vmul.f32 0.2, %v1208_v15 }
 0x1af   : > { %v1278_v37 = vsel %vm1238_vm13, %v1208_v15, %v1258_v7 }
 0x1b0   : > { %v1298_v51 = vpack.c.bf16 %v1278_v37, %v1278_v37  ;;  %v1151_v45 = vpop.f32.mrf.mxu1 }
 0x1b1   : > { %v1152_v36 = vadd.f32 %v1151_v45, %v1093_v5  ;;  %v1099_v17 = vpop.f32.mrf.mxu0 }
 0x1b2   : > { %1319 = vst.msk [vmem:[#allocation2 + $0x34] sm:$0xf] %vm1305_vm6, %v1298_v51  ;;  %v1100_v62 = vadd.f32 %v3542_v46, %v1099_v17 }
 0x1b3   : > { %v1211_v29 = vadd.f32 %v1210_v35, %v1152_v36  ;;  %v1222_v15 = vpop.f32.mrf.mxu2 }
 0x1b5   : > { %vm1239_vm14 = vcmp.ge.f32.partialorder %v1211_v29, 0.0  ;;  %v1259_v38 = vmul.f32 0.2, %v1211_v29 }
 0x1b7   : > { %v1279_v39 = vsel %vm1239_vm14, %v1211_v29, %v1259_v38 }
 0x1b8   : > { %v1299_v40 = vpack.c.bf16 %v1279_v39, %v1279_v39  ;;  %v1153_v16 = vpop.f32.mrf.mxu1 }
 0x1b9   : > { %v1154_v59 = vadd.f32 %v1153_v16, %v1095_v55  ;;  %v1102_v47 = vpop.f32.mrf.mxu0  ;;  %v2745_v16 = vld [vmem:[%s4181_s3 + $0x80] sm:$0xff] }
 0x1ba   : > { %1320 = vst.msk [vmem:[#allocation2 + $0x38] sm:$0xf] %vm1305_vm6, %v1299_v40  ;;  %v1103_v14 = vadd.f32 %v3542_v46, %v1102_v47 }
 0x1bb   : > { %v1213_v30 = vadd.f32 %v1212_v34, %v1154_v59 }
 0x1bd   : > { %vm1240_vm15 = vcmp.ge.f32.partialorder %v1213_v30, 0.0  ;;  %v1260_v57 = vmul.f32 0.2, %v1213_v30 }
 0x1bf   : > { %v1280_v54 = vsel %vm1240_vm15, %v1213_v30, %v1260_v57 }
 0x1c0   : > { %v1300_v20 = vpack.c.bf16 %v1280_v54, %v1280_v54  ;;  %v1156_v24 = vpop.f32.mrf.mxu1 }
 0x1c1   : > { %v1157_v52 = vadd.f32 %v1156_v24, %v1098_v63  ;;  %v1104_v43 = vpop.f32.mrf.mxu0 }
 0x1c2   : > { %1321 = vst.msk [vmem:[#allocation2 + $0x3c] sm:$0xf] %vm1305_vm6, %v1300_v20  ;;  %v1105_v49 = vadd.f32 %v3542_v46, %v1104_v43 }
 0x1c3   : > { %v1216_v58 = vadd.f32 %v1215_v42, %v1157_v52 }
 0x1c5   : > { %vm1241_vm5 = vcmp.ge.f32.partialorder %v1216_v58, 0.0  ;;  %v1261_v61 = vmul.f32 0.2, %v1216_v58 }
 0x1c7   : > { %v1281_v53 = vsel %vm1241_vm5, %v1216_v58, %v1261_v61  ;;  %vm1613_vm5 = vcmask 1040384  }
 0x1c8   : > { %v1301_v23 = vpack.c.bf16 %v1281_v53, %v1281_v53  ;;  %v1158_v0 = vpop.f32.mrf.mxu1 }
 0x1c9   : > { %v1159_v1 = vadd.f32 %v1158_v0, %v1100_v62  ;;  %v1175_v2 = vpop.f32.mrf.mxu0 }
 0x1ca   : > { %1322 = vst.msk [vmem:[#allocation2 + $0x40] sm:$0xf] %vm1305_vm6, %v1301_v23  ;;  %v1176_v25 = vadd.f32 %v1175_v2, %v3548_v56 }
 0x1cb   : > { %v1218_v9 = vadd.f32 %v1217_v10, %v1159_v1 }
 0x1cc   : > { %vm1225_vm7 = vcmp.ge.f32.partialorder %v1176_v25, 0.0  ;;  %v1245_v50 = vmul.f32 0.2, %v1176_v25 }
 0x1cd   : > { %vm1242_vm8 = vcmp.ge.f32.partialorder %v1218_v9, 0.0  ;;  %v1262_v48 = vmul.f32 0.2, %v1218_v9 }
 0x1ce   : > { %v1265_v8 = vsel %vm1225_vm7, %v1176_v25, %v1245_v50  ;;  %vm1614_vm7 = vsmask.f32 256 }
 0x1cf   : > { %v1285_v13 = vpack.c.bf16 %v1265_v8, %v1265_v8  ;;  %v1282_v18 = vsel %vm1242_vm8, %v1218_v9, %v1262_v48 }
 0x1d0   : > { %v1302_v11 = vpack.c.bf16 %v1282_v18, %v1282_v18  ;;  %v1161_v41 = vpop.f32.mrf.mxu1 }
 0x1d1   : > { %1306 = vst.msk [vmem:[#allocation2] sm:$0xf] %vm1305_vm6, %v1285_v13  ;;  %v1162_v26 = vadd.f32 %v1161_v41, %v1103_v14  ;;  %v1177_v22 = vpop.f32.mrf.mxu0 }
 0x1d2   : > { %1323 = vst.msk [vmem:[#allocation2 + $0x44] sm:$0xf] %vm1305_vm6, %v1302_v11  ;;  %v1178_v56 = vadd.f32 %v1177_v22, %v3551_v60  ;;  %v2746_v60 = vld [vmem:[%s4181_s3 + $0x88] sm:$0xff] }
 0x1d3   : > { %v1221_v27 = vadd.f32 %v1220_v3, %v1162_v26  ;;  %2298 = vmatpush.bf16.msrb.mxu2 %v2746_v60 }
 0x1d4   : > { %vm1226_vm9 = vcmp.ge.f32.partialorder %v1178_v56, 0.0  ;;  %v1246_v28 = vmul.f32 0.2, %v1178_v56 }
 0x1d5   : > { %vm1243_vm10 = vcmp.ge.f32.partialorder %v1221_v27, 0.0  ;;  %v1263_v35 = vmul.f32 0.2, %v1221_v27 }
 0x1d6   : > { %v1266_v44 = vsel %vm1226_vm9, %v1178_v56, %v1246_v28 }
 0x1d7   : > { %v1286_v31 = vpack.c.bf16 %v1266_v44, %v1266_v44  ;;  %v1283_v32 = vsel %vm1243_vm10, %v1221_v27, %v1263_v35  ;;  %2299 = vmatpush.bf16.msrb.mxu2 %v2745_v16 }
 0x1d8   : > { %v1303_v33 = vpack.c.bf16 %v1283_v32, %v1283_v32  ;;  %v1163_v6 = vpop.f32.mrf.mxu1 }
 0x1d9   : > { %1307 = vst.msk [vmem:[#allocation2 + $0x4] sm:$0xf] %vm1305_vm6, %v1286_v31  ;;  %v1164_v7 = vadd.f32 %v1163_v6, %v1105_v49  ;;  %v1180_v5 = vpop.f32.mrf.mxu0 }
 0x1da   : > { %1324 = vst.msk [vmem:[#allocation2 + $0x48] sm:$0xf] %vm1305_vm6, %v1303_v33  ;;  %v1181_v37 = vadd.f32 %v1180_v5, %v3560_v12 }
 0x1db   : > { %v1223_v51 = vadd.f32 %v1222_v15, %v1164_v7 }
 0x1dc   : > { %vm1227_vm11 = vcmp.ge.f32.partialorder %v1181_v37, 0.0  ;;  %v1247_v46 = vmul.f32 0.2, %v1181_v37 }
 0x1dd   : > { %vm1244_vm12 = vcmp.ge.f32.partialorder %v1223_v51, 0.0  ;;  %v1264_v45 = vmul.f32 0.2, %v1223_v51 }
 0x1de   : > { %v1267_v34 = vsel %vm1227_vm11, %v1181_v37, %v1247_v46 }
 0x1df   : > { %v1287_v36 = vpack.c.bf16 %v1267_v34, %v1267_v34  ;;  %v1284_v17 = vsel %vm1244_vm12, %v1223_v51, %v1264_v45 }
 0x1e0   : > { %v1304_v29 = vpack.c.bf16 %v1284_v17, %v1284_v17 }
 0x1e1   : > { %1308 = vst.msk [vmem:[#allocation2 + $0x8] sm:$0xf] %vm1305_vm6, %v1287_v36  ;;  %v1182_v38 = vpop.f32.mrf.mxu0 }
 0x1e2   : > { %1325 = vst.msk [vmem:[#allocation2 + $0x4c] sm:$0xf] %vm1305_vm6, %v1304_v29  ;;  %v1183_v55 = vadd.f32 %v1182_v38, %v3563_v4 }
 0x1e4   : > { %vm1228_vm13 = vcmp.ge.f32.partialorder %v1183_v55, 0.0  ;;  %v1248_v39 = vmul.f32 0.2, %v1183_v55 }
 0x1e6   : > { %v1268_v12 = vsel %vm1228_vm13, %v1183_v55, %v1248_v39 }
 0x1e7   : > { %v1288_v40 = vpack.c.bf16 %v1268_v12, %v1268_v12 }
 0x1e9   : > { %1309 = vst.msk [vmem:[#allocation2 + $0xc] sm:$0xf] %vm1305_vm6, %v1288_v40  ;;  %v1185_v59 = vpop.f32.mrf.mxu0 }
 0x1ea   : > { %v1186_v47 = vadd.f32 %v1185_v59, %v3568_v19 }
 0x1ec   : > { %vm1229_vm14 = vcmp.ge.f32.partialorder %v1186_v47, 0.0  ;;  %v1249_v42 = vmul.f32 0.2, %v1186_v47 }
 0x1ee   : > { %v1269_v30 = vsel %vm1229_vm14, %v1186_v47, %v1249_v42 }
 0x1ef   : > { %v1289_v4 = vpack.c.bf16 %v1269_v30, %v1269_v30 }
 0x1f1   : > { %1310 = vst.msk [vmem:[#allocation2 + $0x10] sm:$0xf] %vm1305_vm6, %v1289_v4  ;;  %v1187_v57 = vpop.f32.mrf.mxu0 }
 0x1f2   : > { %v1188_v63 = vadd.f32 %v1187_v57, %v3571_v21 }
 0x1f4   : > { %vm1230_vm15 = vcmp.ge.f32.partialorder %v1188_v63, 0.0  ;;  %v1250_v54 = vmul.f32 0.2, %v1188_v63 }
 0x1f6   : > { %v1270_v20 = vsel %vm1230_vm15, %v1188_v63, %v1250_v54 }
 0x1f7   : > { %v1290_v24 = vpack.c.bf16 %v1270_v20, %v1270_v20 }
 0x1f9   : > { %1311 = vst.msk [vmem:[#allocation2 + $0x14] sm:$0xf] %vm1305_vm6, %v1290_v24  ;;  %vm3633_vm6 = vmand %vm1613_vm5, %vm1614_vm7 }
 0x200   : > { %v2789_v19 = vld [vmem:[%s3623_s26 + $0x10] sm:$0xff]   ;;  %v2788_v52 = vld [vmem:[%s3623_s26 + $0x8] sm:$0xff]   ;;  %v3628_v43 = vld [vmem:[%s3623_s26 + $0x18] sm:$0xff]  }
 0x201   : > { %v2762_v58 = vunpack.c.l.b16 %v2789_v19  ;;  %v1485_v21 = vshrl.u32 %v2789_v19, 16  ;;  %v2758_v10 = vunpack.c.l.b16 %v2788_v52  ;;  %v1488_v61 = vshll.u32 %v2789_v19, 16  ;;  %v2791_v56 = vld [vmem:[%s3623_s26 + $0x20] sm:$0xff]   ;;  %v2792_v57 = vld [vmem:[%s3623_s26 + $0x28] sm:$0xff]  }
 0x202   : > { %v2759_v62 = vunpack.c.h.b16 %v2788_v52  ;;  %v1478_v53 = vshrl.u32 %v2788_v52, 16  ;;  %v2766_v23 = vunpack.c.l.b16 %v3628_v43  ;;  %v1492_v25 = vshrl.u32 %v3628_v43, 16 }
 0x203   : > { %v1386_v0 = vpack.c.b16 %v2762_v58, %v2762_v58  ;;  %v1487_v1 = vrot.slane %v1485_v21, 7  ;;  %v1385_v2 = vpack.c.b16 %v2758_v10, %v2758_v10  ;;  %v1481_v48 = vshll.u32 %v2788_v52, 16 }
 0x204   : > { %v1480_v50 = vrot.slane %v1478_v53, 7  ;;  %v1555_v8 = vpack.c.b16 %v2759_v62, %v2759_v62  ;;  %v1387_v3 = vpack.c.b16 %v2766_v23, %v2766_v23  ;;  %v1494_v11 = vrot.slane %v1492_v25, 7 }
 0x205   : > { %v1403_v14 = vshrl.u32 %v1386_v0, 16  ;;  %v1490_v13 = vor.u32 %v1488_v61, %v1487_v1  ;;  %v1400_v18 = vshrl.u32 %v1385_v2, 16  ;;  %v2763_v22 = vunpack.c.h.b16 %v2789_v19 }
 0x206   : > { %v1483_v41 = vor.u32 %v1481_v48, %v1480_v50  ;;  %v1572_v26 = vshll.u32 %v1555_v8, 16  ;;  %v1495_v28 = vshll.u32 %v3628_v43, 16  ;;  %v1406_v49 = vshrl.u32 %v1387_v3, 16 }
 0x207   : > { %v3640_v27 = vsel %vm3633_vm6, %v1403_v14, %v1490_v13  ;;  %v1556_v31 = vpack.c.b16 %v2763_v22, %v2763_v22  ;;  %v2770_v6 = vunpack.c.l.b16 %v2791_v56  ;;  %v1499_v15 = vshrl.u32 %v2791_v56, 16  ;;  %v2793_v13 = vld [vmem:[%s3623_s26 + $0x30] sm:$0xff]  }
 0x208   : > { %1809 = vrot.lane.b32.xlu2 %v3640_v27, %s2980_s9  ;;  %v1574_v35 = vrot.slane %v1572_v26, 3  ;;  %v3647_v44 = vsel %vm3633_vm6, %v1400_v18, %v1483_v41  ;;  %v1497_v33 = vor.u32 %v1495_v28, %v1494_v11  ;;  %v1675_v34 = vshll.u32 %v3640_v27, 16 }
 0x209   : > { %v1663_v32 = vshll.u32 %v3647_v44, 16  ;;  %v1770_v5 = vrot.slane %v3647_v44, 1  ;;  %v1661_v60 = vshrl.u32 %v3647_v44, 16  ;;  %v1576_v37 = vshll.u32 %v1556_v31, 16 }
 0x20a   : > { %v1628_v7 = vsel %vm3633_vm6, %v1480_v50, %v1574_v35  ;;  %v1388_v55 = vpack.c.b16 %v2770_v6, %v2770_v6  ;;  %v1501_v12 = vrot.slane %v1499_v15, 7  ;;  %v2767_v40 = vunpack.c.h.b16 %v3628_v43 }
 0x20b   : > { %v1771_v51 = vrot.slane %v1628_v7, 1  ;;  %v1665_v46 = vrot.slane %v1663_v32, 1  ;;  %v1668_v45 = vshll.u32 %v1628_v7, 16  ;;  %v1578_v36 = vrot.slane %v1576_v37, 3 }
 0x20c   : > { %v3670_v59 = vsel %vm3633_vm6, %v1406_v49, %v1497_v33  ;;  %v1677_v47 = vrot.slane %v1675_v34, 1  ;;  %v1502_v30 = vshll.u32 %v2791_v56, 16  ;;  %v1557_v4 = vpack.c.b16 %v2767_v40, %v2767_v40 }
 0x20d   : > { %v3656_v17 = vsel %vm540_vm1, %v1770_v5, %v1771_v51  ;;  %v1666_v29 = vor.u32 %v1665_v46, %v1661_v60  ;;  %v1670_v38 = vrot.slane %v1668_v45, 1  ;;  %v1629_v39 = vsel %vm3633_vm6, %v1487_v1, %v1578_v36 }
 0x20e   : > { %1792 = vrot.lane.b32.xlu1 %v3656_v17, %s4196_s17  ;;  %2673 = vmatmul.msk.bf16.vlgmr.msrb.gmra.mxu2 %vm717_vm2, %v3656_v17  ;;  %v1680_v42 = vshll.u32 %v1629_v39, 16  ;;  %v1773_v63 = vrot.slane %v3640_v27, 1  ;;  %v1774_v54 = vrot.slane %v1629_v39, 1  ;;  %v1673_v20 = vshrl.u32 %v3640_v27, 16  ;;  %v3723_v39 = vld [vmem:[%s3623_s26 + $0x38] sm:$0xff]  }
 0x20f   : > { %v3666_v16 = vsel %vm399_vm0, %v1666_v29, %v1670_v38  ;;  %v1409_v24 = vshrl.u32 %v1388_v55, 16  ;;  %v1504_v19 = vor.u32 %v1502_v30, %v1501_v12  ;;  %v1580_v52 = vshll.u32 %v1557_v4, 16 }
 0x210   : > { %1736 = vrot.lane.b32.xlu0 %v3666_v16, %s4195_s15  ;;  %1811 = vrot.lane.b32.xlu2 %v3670_v59, %s2980_s9  ;;  %v1687_v43 = vshll.u32 %v3670_v59, 16  ;;  %v2771_v58 = vunpack.c.h.b16 %v2791_v56  ;;  %v1678_v21 = vor.u32 %v1677_v47, %v1673_v20  ;;  %v1682_v10 = vrot.slane %v1680_v42, 1 }
 0x211   : > { %v2774_v61 = vunpack.c.l.b16 %v2792_v57  ;;  %v1506_v62 = vshrl.u32 %v2792_v57, 16  ;;  %v1582_v53 = vrot.slane %v1580_v52, 3  ;;  %v3681_v0 = vsel %vm540_vm1, %v1773_v63, %v1774_v54 }
 0x212   : > { %v1558_v23 = vpack.c.b16 %v2771_v58, %v2771_v58  ;;  %v3687_v1 = vsel %vm3633_vm6, %v1409_v24, %v1504_v19  ;;  %v1689_v25 = vrot.slane %v1687_v43, 1  ;;  %v3692_v48 = vsel %vm399_vm0, %v1678_v21, %v1682_v10  ;;  %v2753_v58 = vld [vmem:[%s3623_s26] sm:$0xff]   ;;  %s229_s26 = sand.u32 1, %s2954_s19  }
 0x213   : > { %v1630_v2 = vsel %vm3633_vm6, %v1494_v11, %v1582_v53  ;;  %v1389_v3 = vpack.c.b16 %v2774_v61, %v2774_v61  ;;  %v1508_v14 = vrot.slane %v1506_v62, 7  ;;  %v1685_v18 = vshrl.u32 %v3670_v59, 16  ;;  %s2504_s0 = sshll.u32 %s229_s26, 7  ;;  %s2393_s13 = scalar_lea.sflag [#allocation4], %s229_s26 }
 0x214   : > { %v1584_v50 = vshll.u32 %v1558_v23, 16  ;;  %v1692_v8 = vshll.u32 %v1630_v2, 16  ;;  %v2775_v26 = vunpack.c.h.b16 %v2792_v57  ;;  %v1776_v11 = vrot.slane %v3670_v59, 1 }
 0x215   : > { %v1777_v22 = vrot.slane %v1630_v2, 1  ;;  %v1509_v56 = vshll.u32 %v2792_v57, 16  ;;  %v1690_v28 = vor.u32 %v1689_v25, %v1685_v18  ;;  %v2778_v35 = vunpack.c.l.b16 %v2793_v13 }
 0x216   : > { %1794 = vrot.lane.b32.xlu1 %v3681_v0, %s4196_s17  ;;  %v1586_v41 = vrot.slane %v1584_v50, 3  ;;  %v1513_v49 = vshrl.u32 %v2793_v13, 16  ;;  %v1559_v31 = vpack.c.b16 %v2775_v26, %v2775_v26  ;;  %v1694_v32 = vrot.slane %v1692_v8, 1 }
 0x217   : > { %v1412_v33 = vshrl.u32 %v1389_v3, 16  ;;  %v1511_v6 = vor.u32 %v1509_v56, %v1508_v14  ;;  %v1699_v15 = vshll.u32 %v3687_v1, 16  ;;  %v3705_v60 = vsel %vm540_vm1, %v1776_v11, %v1777_v22 }
 0x218   : > { %1738 = vrot.lane.b32.xlu0 %v3692_v48, %s4195_s15  ;;  %1813 = vrot.lane.b32.xlu2 %v3687_v1, %s2980_s9  ;;  %v1631_v7 = vsel %vm3633_vm6, %v1501_v12, %v1586_v41  ;;  %v1588_v5 = vshll.u32 %v1559_v31, 16  ;;  %v1390_v37 = vpack.c.b16 %v2778_v35, %v2778_v35  ;;  %v1515_v51 = vrot.slane %v1513_v49, 7 }
 0x219   : > { %v2779_v46 = vunpack.c.h.b16 %v2793_v13  ;;  %v3712_v45 = vsel %vm399_vm0, %v1690_v28, %v1694_v32  ;;  %v3716_v34 = vsel %vm3633_vm6, %v1412_v33, %v1511_v6  ;;  %v1701_v36 = vrot.slane %v1699_v15, 1 }
 0x21a   : > { %v1704_v29 = vshll.u32 %v1631_v7, 16  ;;  %v1516_v38 = vshll.u32 %v2793_v13, 16  ;;  %v1590_v55 = vrot.slane %v1588_v5, 3  ;;  %v1780_v40 = vrot.slane %v1631_v7, 1 }
 0x21b   : > { %v1560_v12 = vpack.c.b16 %v2779_v46, %v2779_v46  ;;  %v1697_v47 = vshrl.u32 %v3687_v1, 16  ;;  %v1779_v42 = vrot.slane %v3687_v1, 1  ;;  %v1415_v30 = vshrl.u32 %v1390_v37, 16 }
 0x21c   : > { %v1518_v4 = vor.u32 %v1516_v38, %v1515_v51  ;;  %v1711_v57 = vshll.u32 %v3716_v34, 16  ;;  %v1706_v54 = vrot.slane %v1704_v29, 1  ;;  %v2782_v20 = vunpack.c.l.b16 %v3723_v39 }
 0x21d   : > { %v1702_v63 = vor.u32 %v1701_v36, %v1697_v47  ;;  %v1520_v24 = vshrl.u32 %v3723_v39, 16  ;;  %v1632_v19 = vsel %vm3633_vm6, %v1508_v14, %v1590_v55  ;;  %v1592_v52 = vshll.u32 %v1560_v12, 16 }
 0x21e   : > { %1796 = vrot.lane.b32.xlu1 %v3705_v60, %s4196_s17  ;;  %2674 = vmatmul.msk.bf16.gmra.mxu2 %vm717_vm2, %v3681_v0  ;;  %v3733_v43 = vsel %vm540_vm1, %v1779_v42, %v1780_v40  ;;  %v3740_v21 = vsel %vm3633_vm6, %v1415_v30, %v1518_v4  ;;  %v1713_v10 = vrot.slane %v1711_v57, 1  ;;  %v1716_v62 = vshll.u32 %v1632_v19, 16 }
 0x21f   : > { %v3743_v61 = vsel %vm399_vm0, %v1702_v63, %v1706_v54  ;;  %v1391_v53 = vpack.c.b16 %v2782_v20, %v2782_v20  ;;  %v3745_v23 = vrot.slane %v1520_v24, 7  ;;  %v1709_v2 = vshrl.u32 %v3716_v34, 16  ;;  %v2736_v20 = vld [vmem:[%s4181_s3 + $0x38] sm:$0xff]  ;;  %v2735_v24 = vld [vmem:[%s4181_s3 + $0x30] sm:$0xff] }
 0x220   : > { %1740 = vrot.lane.b32.xlu0 %v3712_v45, %s4195_s15  ;;  %1815 = vrot.lane.b32.xlu2 %v3716_v34, %s2980_s9  ;;  %v1594_v25 = vrot.slane %v1592_v52, 3  ;;  %v2755_v50 = vunpack.c.h.b16 %v2753_v58  ;;  %v1783_v8 = vrot.slane %v1632_v19, 1  ;;  %v1523_v3 = vshll.u32 %v3723_v39, 16  ;;  %v2733_v52 = vld [vmem:[%s4181_s3 + $0x20] sm:$0xff] }
 0x221   : > { %v1782_v14 = vrot.slane %v3716_v34, 1  ;;  %v1714_v13 = vor.u32 %v1713_v10, %v1709_v2  ;;  %v1718_v18 = vrot.slane %v1716_v62, 1  ;;  %v1418_v41 = vshrl.u32 %v1391_v53, 16  ;;  %2797 = vmatpush.bf16.msra.mxu3 %v2736_v20  ;;  %2194 = vmatpush.bf16.msrb.mxu1 %v2736_v20  ;;  %v2749_v62 = vld [vmem:[%s1336_s16] sm:$0xff]   ;;  %v2731_v2 = vld [vmem:[%s4181_s3 + $0x10] sm:$0xff] }
 0x222   : > { %v1525_v26 = vor.u32 %v1523_v3, %v3745_v23  ;;  %v1723_v11 = vshll.u32 %v3740_v21, 16  ;;  %v1633_v22 = vsel %vm3633_vm6, %v1515_v51, %v1594_v25  ;;  %v1554_v56 = vpack.c.b16 %v2755_v50, %v2755_v50  ;;  %v2785_v53 = vld [vmem:[%s1360_s30] sm:$0xff]  }
 0x223   : > { %v3759_v28 = vsel %vm540_vm1, %v1782_v14, %v1783_v8  ;;  %v2754_v35 = vunpack.c.l.b16 %v2753_v58  ;;  %v1471_v49 = vshrl.u32 %v2753_v58, 16  ;;  %v3766_v31 = vsel %vm399_vm0, %v1714_v13, %v1718_v18 }
 0x224   : > { %v3770_v32 = vsel %vm3633_vm6, %v1418_v41, %v1525_v26  ;;  %v1725_v33 = vrot.slane %v1723_v11, 1  ;;  %v1728_v6 = vshll.u32 %v1633_v22, 16  ;;  %v1568_v15 = vshll.u32 %v1554_v56, 16  ;;  %v2730_v41 = vld [vmem:[%s4181_s3 + $0x8] sm:$0xff] }
 0x225   : > { %v1786_v7 = vrot.slane %v1633_v22, 1  ;;  %v1721_v5 = vshrl.u32 %v3740_v21, 16  ;;  %v1384_v37 = vpack.c.b16 %v2754_v35, %v2754_v35  ;;  %v1473_v51 = vrot.slane %v1471_v49, 7  ;;  %2798 = vmatpush.bf16.msra.mxu3 %v2735_v24  ;;  %2195 = vmatpush.bf16.msrb.mxu1 %v2735_v24 }
 0x226   : > { %1798 = vrot.lane.b32.xlu1 %v3733_v43, %s4196_s17  ;;  %v1785_v46 = vrot.slane %v3740_v21, 1  ;;  %v1730_v29 = vrot.slane %v1728_v6, 1  ;;  %v1474_v38 = vshll.u32 %v2753_v58, 16  ;;  %v1570_v55 = vrot.slane %v1568_v15, 3 }
 0x227   : > { %v1726_v36 = vor.u32 %v1725_v33, %v1721_v5  ;;  %v1397_v40 = vshrl.u32 %v1384_v37, 16  ;;  %v2783_v19 = vunpack.c.h.b16 %v3723_v39  ;;  %v1824_v25 = vshll.u32 %v3770_v32, 16 }
 0x228   : > { %1742 = vrot.lane.b32.xlu0 %v3743_v61, %s4195_s15  ;;  %1817 = vrot.lane.b32.xlu2 %v3740_v21, %s2980_s9  ;;  %v3779_v12 = vsel %vm540_vm1, %v1785_v46, %v1786_v7  ;;  %v1476_v47 = vor.u32 %v1474_v38, %v1473_v51  ;;  %v3792_v30 = vsel %vm3633_vm6, %v1473_v51, %v1570_v55  ;;  %v2750_v50 = vunpack.c.l.b16 %v2749_v62 }
 0x229   : > { %v3784_v42 = vsel %vm399_vm0, %v1726_v36, %v1730_v29  ;;  %v1768_v57 = vrot.slane %v3792_v30, 1  ;;  %v1561_v39 = vpack.c.b16 %v2783_v19, %v2783_v19  ;;  %v2751_v8 = vunpack.c.h.b16 %v2749_v62 }
 0x22a   : > { %v3796_v4 = vsel %vm3633_vm6, %v1397_v40, %v1476_v47  ;;  %v1464_v3 = vshrl.u32 %v2749_v62, 16  ;;  %v2786_v14 = vunpack.c.l.b16 %v2785_v53  ;;  %v2787_v13 = vunpack.c.h.b16 %v2785_v53  ;;  %v2744_v47 = vld [vmem:[%s4181_s3 + $0x78] sm:$0xff] }
 0x22b   : > { %v1767_v63 = vrot.slane %v3796_v4, 1  ;;  %v1596_v58 = vshll.u32 %v1561_v39, 16  ;;  %v1527_v18 = vshrl.u32 %v2785_v53, 16  ;;  %v1826_v26 = vrot.slane %v1824_v25, 1 }
 0x22c   : > { %v1383_v22 = vpack.c.b16 %v2750_v50, %v2750_v50  ;;  %v1466_v56 = vrot.slane %v1464_v3, 7  ;;  %v1392_v35 = vpack.c.b16 %v2786_v14, %v2786_v14  ;;  %v1562_v33 = vpack.c.b16 %v2787_v13, %v2787_v13 }
 0x22d   : > { %v3805_v54 = vsel %vm540_vm1, %v1767_v63, %v1768_v57  ;;  %v1598_v10 = vrot.slane %v1596_v58, 3  ;;  %v1529_v49 = vrot.slane %v1527_v18, 7  ;;  %v1822_v6 = vshrl.u32 %v3770_v32, 16 }
 0x22e   : > { %1800 = vrot.lane.b32.xlu1 %v3759_v28, %s4196_s17  ;;  %2675 = vmatmul.msk.bf16.gmra.mxu2 %vm717_vm2, %v3705_v60  ;;  %v1467_v15 = vshll.u32 %v2749_v62, 16  ;;  %v1530_v7 = vshll.u32 %v2785_v53, 16  ;;  %v1394_v51 = vshrl.u32 %v1383_v22, 16  ;;  %v1421_v29 = vshrl.u32 %v1392_v35, 16 }
 0x22f   : > { %v1827_v5 = vor.u32 %v1826_v26, %v1822_v6  ;;  %v1600_v55 = vshll.u32 %v1562_v33, 16  ;;  %v1834_v39 = vrot.slane %v3770_v32, 1  ;;  %v1651_v35 = vshll.u32 %v3796_v4, 16 }
 0x230   : > { %1744 = vrot.lane.b32.xlu0 %v3766_v31, %s4195_s15  ;;  %1819 = vrot.lane.b32.xlu2 %v3770_v32, %s2980_s9  ;;  %v1469_v46 = vor.u32 %v1467_v15, %v1466_v56  ;;  %v1532_v38 = vor.u32 %v1530_v7, %v1529_v49  ;;  %v1656_v15 = vshll.u32 %v3792_v30, 16 }
 0x231   : > { %v1602_v24 = vrot.slane %v1600_v55, 3  ;;  %v1653_v6 = vrot.slane %v1651_v35, 1 }
 0x232   : > { %v3890_v20 = vsel %vm3633_vm6, %v1394_v51, %v1469_v46  ;;  %v1625_v19 = vsel %vm3633_vm6, %v1421_v29, %v1532_v38 }
 0x233   : > { %v1873_v58 = vshll.u32 %v1625_v19, 16  ;;  %v1871_v3 = vshrl.u32 %v1625_v19, 16 }
 0x236   : > { %1802 = vrot.lane.b32.xlu1 %v3779_v12, %s4196_s17 }
 0x238   : > { %1746 = vrot.lane.b32.xlu0 %v3784_v42, %s4195_s15  ;;  %1882 = vrot.lane.b32.xlu2 %v3666_v16, %s2980_s9 }
 0x23e   : > { %1854 = vrot.lane.b32.xlu1 %v3647_v44, %s4196_s17  ;;  %2676 = vmatmul.msk.bf16.gmra.mxu2 %vm717_vm2, %v3733_v43 }
 0x240   : > { %1837 = vrot.lane.b32.xlu0 %v3805_v54, %s4195_s15  ;;  %1884 = vrot.lane.b32.xlu2 %v3692_v48, %s2980_s9 }
 0x246   : > { %1856 = vrot.lane.b32.xlu1 %v3640_v27, %s4196_s17 }
 0x248   : > { %1839 = vrot.lane.b32.xlu0 %v3656_v17, %s4195_s15  ;;  %1886 = vrot.lane.b32.xlu2 %v3712_v45, %s2980_s9  ;;  %v2734_v17 = vld [vmem:[%s4181_s3 + $0x28] sm:$0xff] }
 0x249   : > { %2799 = vmatpush.bf16.msra.mxu3 %v2734_v17  ;;  %2196 = vmatpush.bf16.msrb.mxu1 %v2734_v17 }
 0x24d   : > { %2800 = vmatpush.bf16.msra.mxu3 %v2733_v52  ;;  %2197 = vmatpush.bf16.msrb.mxu1 %v2733_v52  ;;  %v1639_v52 = vshll.u32 %v3890_v20, 16 }
 0x24e   : > { %1858 = vrot.lane.b32.xlu1 %v3670_v59, %s4196_s17  ;;  %2677 = vmatmul.msk.bf16.gmra.mxu2 %vm717_vm2, %v3759_v28 }
 0x24f   : > { %v1641_v62 = vrot.slane %v1639_v52, 1 }
 0x250   : > { %1841 = vrot.lane.b32.xlu0 %v3681_v0, %s4195_s15  ;;  %1888 = vrot.lane.b32.xlu2 %v3743_v61, %s2980_s9  ;;  %v2732_v0 = vld [vmem:[%s4181_s3 + $0x18] sm:$0xff] }
 0x251   : > { %2801 = vmatpush.bf16.msra.mxu3 %v2732_v0  ;;  %2198 = vmatpush.bf16.msrb.mxu1 %v2732_v0  ;;  %v1635_v0 = vsel %vm3633_vm6, %v1529_v49, %v1602_v24  ;;  %v2742_v49 = vld [vmem:[%s4181_s3 + $0x68] sm:$0xff] }
 0x252   : > { %v1878_v25 = vshll.u32 %v1635_v0, 16  ;;  %v1900_v22 = vrot.slane %v1635_v0, 1 }
 0x255   : > { %2802 = vmatpush.bf16.msra.mxu3 %v2731_v2  ;;  %2199 = vmatpush.bf16.msrb.mxu1 %v2731_v2  ;;  %v1875_v2 = vrot.slane %v1873_v58, 1 }
 0x256   : > { %1860 = vrot.lane.b32.xlu1 %v3687_v1, %s4196_s17 }
 0x257   : > { %v1876_v18 = vor.u32 %v1875_v2, %v1871_v3 }
 0x258   : > { %1843 = vrot.lane.b32.xlu0 %v3705_v60, %s4195_s15  ;;  %1890 = vrot.lane.b32.xlu2 %v3766_v31, %s2980_s9  ;;  %v1634_v60 = vsel %vm3633_vm6, %v3745_v23, %v1598_v10  ;;  %v1553_v23 = vpack.c.b16 %v2751_v8, %v2751_v8  ;;  %v1637_v8 = vshrl.u32 %v3890_v20, 16 }
 0x259   : > { %v1829_v11 = vshll.u32 %v1634_v60, 16  ;;  %2803 = vmatpush.bf16.msra.mxu3 %v2730_v41  ;;  %2200 = vmatpush.bf16.msrb.mxu1 %v2730_v41  ;;  %v1835_v17 = vrot.slane %v1634_v60, 1  ;;  %v1764_v60 = vrot.slane %v3890_v20, 1  ;;  %v1880_v41 = vrot.slane %v1878_v25, 1 }
 0x25a   : > { %v1564_v36 = vshll.u32 %v1553_v23, 16  ;;  %v1642_v14 = vor.u32 %v1641_v62, %v1637_v8  ;;  %v1899_v23 = vrot.slane %v1625_v19, 1  ;;  %v2738_v8 = vld [vmem:[%s4181_s3 + $0x48] sm:$0xff] }
 0x25b   : > { %v1831_v37 = vrot.slane %v1829_v11, 1  ;;  %v1836_v10 = vsel %vm540_vm1, %v1834_v39, %v1835_v17  ;;  %v1881_v11 = vsel %vm399_vm0, %v1876_v18, %v1880_v41  ;;  %v2740_v39 = vld [vmem:[%s4181_s3 + $0x58] sm:$0xff] }
 0x25c   : > { %v1566_v63 = vrot.slane %v1564_v36, 3  ;;  %v1901_v33 = vsel %vm540_vm1, %v1899_v23, %v1900_v22 }
 0x25d   : > { %v3882_v57 = vsel %vm399_vm0, %v1827_v5, %v1831_v37  ;;  %v1649_v5 = vshrl.u32 %v3796_v4, 16 }
 0x25e   : > { %1862 = vrot.lane.b32.xlu1 %v3716_v34, %s4196_s17  ;;  %2678 = vmatmul.msk.bf16.gmra.mxu2 %vm717_vm2, %v3779_v12 }
 0x25f   : > { %v1654_v46 = vor.u32 %v1653_v6, %v1649_v5 }
 0x260   : > { %1845 = vrot.lane.b32.xlu0 %v3733_v43, %s4195_s15  ;;  %1892 = vrot.lane.b32.xlu2 %v3784_v42, %s2980_s9  ;;  %v2729_v43 = vld [vmem:[%s4181_s3] sm:$0xff] }
 0x261   : > { %2804 = vmatpush.bf16.msra.mxu3 %v2729_v43  ;;  %2201 = vmatpush.bf16.msrb.mxu1 %v2729_v43  ;;  %v1658_v43 = vrot.slane %v1656_v15, 1 }
 0x262   : > { %v3874_v40 = vpop.permute.xlu2 %1809 }
 0x263   : > { %v3939_v38 = vsel %vm399_vm0, %v1654_v46, %v1658_v43 }
 0x265   : > { %2243 = vmatpush.bf16.msrb.mxu3 %v2744_v47 }
 0x266   : > { %1864 = vrot.lane.b32.xlu1 %v3740_v21, %s4196_s17 }
 0x268   : > { %1847 = vrot.lane.b32.xlu0 %v3759_v28, %s4195_s15  ;;  %1894 = vrot.lane.b32.xlu2 %v3882_v57, %s2980_s9  ;;  %v1626_v28 = vsel %vm3633_vm6, %v1466_v56, %v1566_v63 }
 0x269   : > { %v1644_v53 = vshll.u32 %v1626_v28, 16  ;;  %v1765_v9 = vrot.slane %v1626_v28, 1 }
 0x26a   : > { %v1812_v50 = vpop.permute.xlu2 %1811 }
 0x26b   : > { %v1646_v13 = vrot.slane %v1644_v53, 1 }
 0x26d   : > { %v1647_v26 = vsel %vm399_vm0, %v1642_v14, %v1646_v13 }
 0x26e   : > { %1866 = vrot.lane.b32.xlu1 %v3770_v32, %s4196_s17  ;;  %2679 = vmatmul.msk.bf16.gmra.mxu2 %vm717_vm2, %v1836_v10  ;;  %v2743_v32 = vld [vmem:[%s4181_s3 + $0x70] sm:$0xff] }
 0x26f   : > { %2244 = vmatpush.bf16.msrb.mxu3 %v2743_v32 }
 0x270   : > { %1849 = vrot.lane.b32.xlu0 %v3779_v12, %s4195_s15  ;;  %1805 = vrot.lane.b32.xlu2 %v3796_v4, %s2980_s9  ;;  %v1766_v12 = vsel %vm540_vm1, %v1764_v60, %v1765_v9 }
 0x272   : > { %v1814_v56 = vpop.permute.xlu2 %1813 }
 0x273   : > { %2245 = vmatpush.bf16.msrb.mxu3 %v2742_v49 }
 0x276   : > { %1788 = vrot.lane.b32.xlu1 %v1766_v12, %s4196_s17  ;;  %v2737_v12 = vld [vmem:[%s4181_s3 + $0x40] sm:$0xff] }
 0x278   : > { %1732 = vrot.lane.b32.xlu0 %v1647_v26, %s4195_s15  ;;  %1896 = vrot.lane.b32.xlu2 %v1881_v11, %s2980_s9 }
 0x27a   : > { %v1816_v36 = vpop.permute.xlu2 %1815 }
 0x27e   : > { %2680 = vmatmul.msk.bf16.gmra.mxu2 %vm717_vm2, %v1901_v33  ;;  %1868 = vrot.lane.b32.xlu1 %v1625_v19, %s4196_s17 }
 0x280   : > { %v1793_v7 = vpop.permute.xlu1 %1792  ;;  %1851 = vrot.lane.b32.xlu0 %v1836_v10, %s4195_s15  ;;  %1807 = vrot.lane.b32.xlu2 %v3647_v44, %s2980_s9  ;;  %s4052_s9 = scalar_lea.vmem %s3102_s27, %s2682_s12  ;;  %s2747_s27 = sshll.u32 %s2962_s21, 4 }
 0x282   : > { %v1737_v37 = vpop.permute.xlu0 %1736  ;;  %v1818_v63 = vpop.permute.xlu2 %1817 }
 0x283   : > { %v1907_v51 = vsel %vm717_vm2, %v3647_v44, %v1737_v37  ;;  %v2741_v44 = vld [vmem:[%s4181_s3 + $0x60] sm:$0xff] }
 0x284   : > { %v1923_v29 = vsel %vm738_vm3, %v1907_v51, %v1793_v7  ;;  %2246 = vmatpush.bf16.msrb.mxu3 %v2741_v44 }
 0x285   : > { %v1941_v30 = vsel %vm759_vm4, %v1923_v29, %v3874_v40 }
 0x286   : > { %2212 = vmatmul.bf16.vlgmr.msra.gmra.mxu3 %v1941_v30  ;;  %1790 = vrot.lane.b32.xlu1 %v3805_v54, %s4196_s17  ;;  %s4057_s17 = scalar_lea.vmem [#allocation3], %s2504_s0 }
 0x287   : > { %s2408_s8 = sshll.u32 %s4057_s17, 4  ;;  %s2409_s8 = int_to_ptr.vmem [resolvable:$true] %s2408_s8 }
 0x288   : > { %v1795_v55 = vpop.permute.xlu1 %1794  ;;  %1734 = vrot.lane.b32.xlu0 %v3939_v38, %s4195_s15  ;;  %2247 = vmatpush.bf16.msrb.mxu3 %v2740_v39  ;;  %s2405_s15 = sadd.s32 %s2747_s27, %s2702_s1 }
 0x289   : > { %s2703_s2 = sshll.u32 %s2405_s15, 3 }
 0x28a   : > { %v1739_v47 = vpop.permute.xlu0 %1738  ;;  %v1820_v52 = vpop.permute.xlu2 %1819  ;;  %s2407_s10 = scalar_lea.hbm %s4183_s5, %s2703_s2 }
 0x28b   : > { %v1909_v40 = vsel %vm717_vm2, %v3640_v27, %v1739_v47  ;;  %v2739_v27 = vld [vmem:[%s4181_s3 + $0x50] sm:$0xff]  ;;  %s2410_s14 = sshll.u32 %s2407_s10, 4  ;;  %s2411_s14 = int_to_ptr.hbm [resolvable:$true] %s2410_s14 }
 0x28c   : > { %v1925_v54 = vsel %vm738_vm3, %v1909_v40, %v1795_v55  ;;  %2248 = vmatpush.bf16.msrb.mxu3 %v2739_v27  ;;  %s2898_s12 = sshra.s32 %s2411_s14, 4  ;;  %s2899_s12 = int_to_ptr.hbm [resolvable:$true] %s2898_s12 }
 0x28d   : > { %v1944_v17 = vsel %vm759_vm4, %v1925_v54, %v1812_v50  ;;  %s2900_s16 = scalar_lea.hbm %s2899_s12, 128  ;;  %p2905_p7 = scmp.lt.s32.totalorder %s2899_s12, %s4183_s5 }
 0x28e   : > { %p2901_p4 = scmp.ne.s32.totalorder %s2899_s12, %s2900_s16 }
 0x290   : > { %v1797_v24 = vpop.permute.xlu1 %1796  ;;  %2249 = vmatpush.bf16.msrb.mxu3 %v2738_v8  ;;  %p2902_p5 = pnand %p2901_p4, %p3066_p3 }
 0x292   : > { %v1741_v19 = vpop.permute.xlu0 %1740  ;;  %v1883_v62 = vpop.permute.xlu2 %1882  ;;  %p2903_p6 = pneg %p2902_p5 }
 0x293   : > { %v1911_v0 = vsel %vm717_vm2, %v3670_v59, %v1741_v19 }
 0x294   : > { %v1927_v2 = vsel %vm738_vm3, %v1911_v0, %v1797_v24  ;;  %2250 = vmatpush.bf16.msrb.mxu3 %v2737_v12 }
 0x295   : > { %v1947_v25 = vsel %vm759_vm4, %v1927_v2, %v1814_v56 }
 0x296   : > { %2217 = vmatmul.bf16.gmra.mxu3 %v1944_v17 }
 0x298   : > { %v1799_v58 = vpop.permute.xlu1 %1798 }
 0x29a   : > { %v1743_v28 = vpop.permute.xlu0 %1742  ;;  %v3963_v59 = vpop.permute.xlu2 %1884 }
 0x29b   : > { %v1913_v3 = vsel %vm717_vm2, %v3687_v1, %v1743_v28 }
 0x29c   : > { %v1929_v14 = vsel %vm738_vm3, %v1913_v3, %v1799_v58 }
 0x29d   : > { %v1950_v13 = vsel %vm759_vm4, %v1929_v14, %v1816_v36 }
 0x2a0   : > { %v1801_v10 = vpop.permute.xlu1 %1800 }
 0x2a2   : > { %v1745_v53 = vpop.permute.xlu0 %1744  ;;  %v1887_v18 = vpop.permute.xlu2 %1886 }
 0x2a3   : > { %v1915_v11 = vsel %vm717_vm2, %v3716_v34, %v1745_v53 }
 0x2a4   : > { %v1931_v23 = vsel %vm738_vm3, %v1915_v11, %v1801_v10 }
 0x2a5   : > { %v1953_v35 = vsel %vm759_vm4, %v1931_v23, %v1818_v63  ;;  %v2301_v23 = vpop.f32.mrf.mxu2 }
 0x2a6   : > { %2222 = vmatmul.bf16.gmra.mxu3 %v1947_v25 }
 0x2a8   : > { %v1803_v50 = vpop.permute.xlu1 %1802 }
 0x2aa   : > { %v1747_v9 = vpop.permute.xlu0 %1746  ;;  %v1889_v22 = vpop.permute.xlu2 %1888 }
 0x2ab   : > { %v1917_v15 = vsel %vm717_vm2, %v3740_v21, %v1747_v9 }
 0x2ac   : > { %v1933_v34 = vsel %vm738_vm3, %v1917_v15, %v1803_v50 }
 0x2ad   : > { %v1956_v36 = vsel %vm759_vm4, %v1933_v34, %v1820_v52 }
 0x2b0   : > { %v1855_v32 = vpop.permute.xlu1 %1854 }
 0x2b2   : > { %v1838_v60 = vpop.permute.xlu0 %1837  ;;  %v1891_v33 = vpop.permute.xlu2 %1890 }
 0x2b3   : > { %v1960_v47 = vsel %vm717_vm2, %v3939_v38, %v1838_v60 }
 0x2b4   : > { %v1983_v19 = vsel %vm738_vm3, %v1960_v47, %v1855_v32  ;;  %v2684_v47 = vld [vmem:[%s4052_s9 + $0x21] sm:$0xff] }
 0x2b5   : > { %v1999_v17 = vsel %vm759_vm4, %v1983_v19, %v1883_v62 }
 0x2b6   : > { %2227 = vmatmul.bf16.gmra.mxu3 %v1950_v13 }
 0x2b8   : > { %v1857_v41 = vpop.permute.xlu1 %1856 }
 0x2ba   : > { %v1840_v26 = vpop.permute.xlu0 %1839  ;;  %v1893_v43 = vpop.permute.xlu2 %1892 }
 0x2bb   : > { %v1963_v62 = vsel %vm717_vm2, %v3666_v16, %v1840_v26 }
 0x2bc   : > { %v1985_v50 = vsel %vm738_vm3, %v1963_v62, %v1857_v41 }
 0x2bd   : > { %v2002_v8 = vsel %vm759_vm4, %v1985_v50, %v3963_v59  ;;  %v2687_v50 = vld [vmem:[%s4052_s9 + $0x49] sm:$0xff] }
 0x2c0   : > { %v1859_v1 = vpop.permute.xlu1 %1858 }
 0x2c2   : > { %v1842_v56 = vpop.permute.xlu0 %1841  ;;  %v1895_v44 = vpop.permute.xlu2 %1894 }
 0x2c3   : > { %v1966_v7 = vsel %vm717_vm2, %v3692_v48, %v1842_v56 }
 0x2c4   : > { %v1987_v51 = vsel %vm738_vm3, %v1966_v7, %v1859_v1 }
 0x2c5   : > { %v2005_v46 = vsel %vm759_vm4, %v1987_v51, %v1887_v18 }
 0x2c6   : > { %2232 = vmatmul.bf16.gmra.mxu3 %v1953_v35 }
 0x2c8   : > { %v1861_v49 = vpop.permute.xlu1 %1860 }
 0x2ca   : > { %v1844_v6 = vpop.permute.xlu0 %1843  ;;  %v1806_v52 = vpop.permute.xlu2 %1805 }
 0x2cb   : > { %v1969_v29 = vsel %vm717_vm2, %v3712_v45, %v1844_v6 }
 0x2cc   : > { %v1989_v55 = vsel %vm738_vm3, %v1969_v29, %v1861_v49  ;;  %v2303_v49 = vpop.f32.mrf.mxu2 }
 0x2cd   : > { %v2008_v48 = vsel %vm759_vm4, %v1989_v55, %v1889_v22 }
 0x2d0   : > { %v1863_v5 = vpop.permute.xlu1 %1862 }
 0x2d2   : > { %v1846_v37 = vpop.permute.xlu0 %1845  ;;  %v1897_v2 = vpop.permute.xlu2 %1896 }
 0x2d3   : > { %v1972_v63 = vsel %vm717_vm2, %v3743_v61, %v1846_v37 }
 0x2d4   : > { %v1991_v54 = vsel %vm738_vm3, %v1972_v63, %v1863_v5  ;;  %v2306_v6 = vpop.f32.mrf.mxu2  ;;  %v4047_v5 = vld [vmem:[%s4182_s4] ss:$0 sm:$0xff] }
 0x2d5   : > { %v2011_v45 = vsel %vm759_vm4, %v1991_v54, %v1891_v33 }
 0x2d6   : > { %2237 = vmatmul.bf16.gmra.mxu3 %v1956_v36 }
 0x2d8   : > { %v1865_v30 = vpop.permute.xlu1 %1864 }
 0x2da   : > { %v1848_v21 = vpop.permute.xlu0 %1847  ;;  %v1808_v60 = vpop.permute.xlu2 %1807 }
 0x2db   : > { %v1975_v39 = vsel %vm717_vm2, %v3766_v31, %v1848_v21 }
 0x2dc   : > { %v1993_v28 = vsel %vm738_vm3, %v1975_v39, %v1865_v30  ;;  %v2308_v37 = vpop.f32.mrf.mxu2  ;;  %v2685_v39 = vld [vmem:[%s4052_s9 + $0x31] sm:$0xff] }
 0x2dd   : > { %v2014_v0 = vsel %vm759_vm4, %v1993_v28, %v1893_v43  ;;  %v2683_v43 = vld [vmem:[%s4052_s9 + $0x19] sm:$0xff] }
 0x2e0   : > { %v1867_v40 = vpop.permute.xlu1 %1866 }
 0x2e2   : > { %v1850_v24 = vpop.permute.xlu0 %1849 }
 0x2e3   : > { %v1978_v31 = vsel %vm717_vm2, %v3784_v42, %v1850_v24 }
 0x2e6   : > { %2251 = vmatmul.bf16.vlgmr.msrb.gmra.mxu3 %v1999_v17 }
 0x2e8   : > { %v1789_v58 = vpop.permute.xlu1 %1788 }
 0x2ea   : > { %v1733_v38 = vpop.permute.xlu0 %1732 }
 0x2eb   : > { %v1903_v61 = vsel %vm717_vm2, %v3890_v20, %v1733_v38  ;;  %v1995_v20 = vsel %vm738_vm3, %v1978_v31, %v1867_v40 }
 0x2ec   : > { %v1919_v10 = vsel %vm738_vm3, %v1903_v61, %v1789_v58  ;;  %v2017_v9 = vsel %vm759_vm4, %v1995_v20, %v1895_v44 }
 0x2ed   : > { %v1935_v27 = vsel %vm759_vm4, %v1919_v10, %v1806_v52  ;;  %v2686_v10 = vld [vmem:[%s4052_s9 + $0x39] sm:$0xff] }
 0x2ee   : > { %2202 = vmatmul.bf16.vlgmr.msrb.gmra.mxu1 %v1935_v27 }
 0x2f0   : > { %v1869_v53 = vpop.permute.xlu1 %1868 }
 0x2f2   : > { %v1852_v25 = vpop.permute.xlu0 %1851 }
 0x2f3   : > { %v1981_v13 = vsel %vm717_vm2, %v3882_v57, %v1852_v25 }
 0x2f4   : > { %v1997_v18 = vsel %vm738_vm3, %v1981_v13, %v1869_v53 }
 0x2f5   : > { %v2020_v41 = vsel %vm759_vm4, %v1997_v18, %v1897_v2 }
 0x2f6   : > { %2256 = vmatmul.bf16.gmra.mxu3 %v2002_v8 }
 0x2f8   : > { %v1791_v32 = vpop.permute.xlu1 %1790 }
 0x2fa   : > { %v1735_v3 = vpop.permute.xlu0 %1734 }
 0x2fb   : > { %v1905_v16 = vsel %vm717_vm2, %v3796_v4, %v1735_v3 }
 0x2fc   : > { %v1921_v42 = vsel %vm738_vm3, %v1905_v16, %v1791_v32 }
 0x2fd   : > { %v1938_v14 = vsel %vm759_vm4, %v1921_v42, %v1808_v60  ;;  %v2688_v60 = vld [vmem:[%s4052_s9 + $0x51] sm:$0xff] }
 0x2fe   : > { %2207 = vmatmul.bf16.gmra.mxu1 %v1938_v14 }
 0x306   : > { %2261 = vmatmul.bf16.gmra.mxu3 %v2005_v46 }
 0x309   : > { %v2213_v59 = vpop.f32.mrf.mxu3 }
 0x30a   : > { %v2214_v27 = vadd.f32 %v4047_v5, %v2213_v59  ;;  %v2689_v59 = vld [vmem:[%s4052_s9 + $0x61] sm:$0xff] }
 0x311   : > { %v4021_v12 = vpop.f32.mrf.mxu3 }
 0x312   : > { %v2216_v8 = vadd.f32 %v4047_v5, %v4021_v12 }
 0x316   : > { %2266 = vmatmul.bf16.gmra.mxu3 %v2008_v48  ;;  %v2311_v48 = vpop.f32.mrf.mxu2 }
 0x319   : > { %v4023_v26 = vpop.f32.mrf.mxu3 }
 0x31a   : > { %v2219_v13 = vadd.f32 %v4047_v5, %v4023_v26 }
 0x31e   : > { %v2313_v17 = vpop.f32.mrf.mxu2 }
 0x321   : > { %v4025_v4 = vpop.f32.mrf.mxu3 }
 0x326   : > { %2271 = vmatmul.bf16.gmra.mxu3 %v2011_v45  ;;  %v2316_v31 = vpop.f32.mrf.mxu2 }
 0x329   : > { %v4027_v11 = vpop.f32.mrf.mxu3 }
 0x32e   : > { %v2318_v16 = vpop.f32.mrf.mxu2 }
 0x331   : > { %v4029_v22 = vpop.f32.mrf.mxu3 }
 0x336   : > { %2276 = vmatmul.bf16.gmra.mxu3 %v2014_v0 }
 0x339   : > { %v4031_v57 = vpop.f32.mrf.mxu3 }
 0x341   : > { %v4033_v1 = vpop.f32.mrf.mxu3 }
 0x346   : > { %2281 = vmatmul.bf16.gmra.mxu3 %v2017_v9 }
 0x349   : > { %v4035_v56 = vpop.f32.mrf.mxu3 }
 0x351   : > { %v4037_v35 = vpop.f32.mrf.mxu3 }
 0x356   : > { %2286 = vmatmul.bf16.gmra.mxu3 %v2020_v41 }
 0x359   : > { %v4039_v33 = vpop.f32.mrf.mxu3 }
 0x361   : > { %v4041_v15 = vpop.f32.mrf.mxu3 }
 0x369   : > { %v2252_v7 = vpop.f32.mrf.mxu3 }
 0x36b   : > { %v2203_v34 = vpop.f32.mrf.mxu1 }
 0x36c   : > { %v2204_v51 = vadd.f32 %v4047_v5, %v2203_v34  ;;  %v2690_v34 = vld [vmem:[%s4052_s9 + $0x69] sm:$0xff] }
 0x36e   : > { %v2253_v46 = vadd.f32 %v2252_v7, %v2204_v51 }
 0x370   : > { %v2302_v36 = vadd.f32 %v2301_v23, %v2253_v46  ;;  %v2321_v23 = vpop.f32.mrf.mxu2 }
 0x371   : > { %v2254_v29 = vpop.f32.mrf.mxu3 }
 0x372   : > { %v2360_v30 = vadd.f32 %v2683_v43, %v2302_v36  ;;  %v2224_v43 = vadd.f32 %v4047_v5, %v4027_v11  ;;  %v2692_v11 = vld [vmem:[%s4052_s9 + $0x81] sm:$0xff] }
 0x373   : > { %v2205_v21 = vpop.f32.mrf.mxu1 }
 0x374   : > { %2376 = vst.msk [vmem:[%s4057_s17] sm:$0xff] %vm717_vm2, %v2360_v30  ;;  %v2206_v55 = vadd.f32 %v4047_v5, %v2205_v21  ;;  %v2691_v30 = vld [vmem:[%s4052_s9 + $0x79] sm:$0xff] }
 0x376   : > { %v2255_v44 = vadd.f32 %v2254_v29, %v2206_v55  ;;  %v2226_v55 = vadd.f32 %v4047_v5, %v4029_v22  ;;  %v2693_v22 = vld [vmem:[%s4052_s9 + $0x91] sm:$0xff] }
 0x378   : > { %v2304_v63 = vadd.f32 %v2303_v49, %v2255_v44  ;;  %v2323_v46 = vpop.f32.mrf.mxu2 }
 0x379   : > { %v2257_v40 = vpop.f32.mrf.mxu3 }
 0x37a   : > { %v2361_v24 = vadd.f32 %v2684_v47, %v2304_v63 }
 0x37b   : > { %v2208_v19 = vpop.f32.mrf.mxu1 }
 0x37c   : > { %2377 = vst.msk [vmem:[%s4057_s17 + $0x8] sm:$0xff] %vm717_vm2, %v2361_v24  ;;  %v2209_v54 = vadd.f32 %v4047_v5, %v2208_v19  ;;  %v2229_v24 = vadd.f32 %v4047_v5, %v4031_v57 }
 0x37e   : > { %v2258_v45 = vadd.f32 %v2257_v40, %v2209_v54 }
 0x380   : > { %v2307_v52 = vadd.f32 %v2306_v6, %v2258_v45  ;;  %v2221_v6 = vadd.f32 %v4047_v5, %v4025_v4 }
 0x381   : > { %v2259_v58 = vpop.f32.mrf.mxu3 }
 0x382   : > { %v2362_v38 = vadd.f32 %v2685_v39, %v2307_v52  ;;  %v2231_v52 = vadd.f32 %v4047_v5, %v4033_v1 }
 0x383   : > { %v2210_v28 = vpop.f32.mrf.mxu1 }
 0x384   : > { %2378 = vst.msk [vmem:[%s4057_s17 + $0x10] sm:$0xff] %vm717_vm2, %v2362_v38  ;;  %v2211_v61 = vadd.f32 %v4047_v5, %v2210_v28  ;;  %v2694_v28 = vld [vmem:[%s4052_s9 + $0x99] sm:$0xff] }
 0x386   : > { %v2260_v0 = vadd.f32 %v2259_v58, %v2211_v61 }
 0x388   : > { %v2309_v62 = vadd.f32 %v2308_v37, %v2260_v0 }
 0x389   : > { %v2262_v53 = vpop.f32.mrf.mxu3 }
 0x38a   : > { %v2363_v2 = vadd.f32 %v2686_v10, %v2309_v62  ;;  %v2263_v25 = vadd.f32 %v2262_v53, %v2214_v27  ;;  %v2234_v10 = vadd.f32 %v4047_v5, %v4035_v56  ;;  %v2695_v62 = vld [vmem:[%s4052_s9 + $0xa9] sm:$0xff] }
 0x38c   : > { %2379 = vst.msk [vmem:[%s4057_s17 + $0x18] sm:$0xff] %vm717_vm2, %v2363_v2  ;;  %v2312_v20 = vadd.f32 %v2311_v48, %v2263_v25  ;;  %v2326_v48 = vpop.f32.mrf.mxu2  ;;  %v2236_v25 = vadd.f32 %v4047_v5, %v4037_v35 }
 0x38e   : > { %v2364_v9 = vadd.f32 %v2687_v50, %v2312_v20 }
 0x390   : > { %2380 = vst.msk [vmem:[%s4057_s17 + $0x20] sm:$0xff] %vm717_vm2, %v2364_v9  ;;  %v2696_v9 = vld [vmem:[%s4052_s9 + $0xb1] sm:$0xff] }
 0x391   : > { %v2264_v3 = vpop.f32.mrf.mxu3 }
 0x392   : > { %v2265_v32 = vadd.f32 %v2264_v3, %v2216_v8  ;;  %v2239_v3 = vadd.f32 %v4047_v5, %v4039_v33 }
 0x394   : > { %v2314_v42 = vadd.f32 %v2313_v17, %v2265_v32  ;;  %v2328_v45 = vpop.f32.mrf.mxu2 }
 0x396   : > { %v2365_v14 = vadd.f32 %v2688_v60, %v2314_v42  ;;  %v2697_v60 = vld [vmem:[%s4052_s9 + $0xc1] sm:$0xff] }
 0x398   : > { %2381 = vst.msk [vmem:[%s4057_s17 + $0x28] sm:$0xff] %vm717_vm2, %v2365_v14 }
 0x399   : > { %v2267_v18 = vpop.f32.mrf.mxu3 }
 0x39a   : > { %v2268_v41 = vadd.f32 %v2267_v18, %v2219_v13  ;;  %v2241_v13 = vadd.f32 %v4047_v5, %v4041_v15 }
 0x39c   : > { %v2317_v12 = vadd.f32 %v2316_v31, %v2268_v41  ;;  %v2331_v61 = vpop.f32.mrf.mxu2 }
 0x39e   : > { %v2366_v49 = vadd.f32 %v2689_v59, %v2317_v12  ;;  %v2698_v59 = vld [vmem:[%s4052_s9 + $0xc9] sm:$0xff]  ;;  %s2904_s9 = scalar_lea.hbm %s4183_s5, 512 }
 0x39f   : > { %p2906_p9 = scmp.lt.s32.totalorder %s2904_s9, %s2900_s16 }
 0x3a0   : > { %2382 = vst.msk [vmem:[%s4057_s17 + $0x30] sm:$0xff] %vm717_vm2, %v2366_v49 }
 0x3a1   : > { %v2269_v7 = vpop.f32.mrf.mxu3  ;;  %p2907_p10 = por %p2906_p9, %p2905_p7 }
 0x3a2   : > { %v2270_v37 = vadd.f32 %v2269_v7, %v2221_v6 }
 0x3a3   : > { %p2908_p11 = pnand %p2907_p10, %p2903_p6 }
 0x3a4   : > { %v2319_v26 = vadd.f32 %v2318_v16, %v2270_v37  ;;  %v2333_v2 = vpop.f32.mrf.mxu2 }
 0x3a6   : > { %v2367_v51 = vadd.f32 %v2690_v34, %v2319_v26 }
 0x3a8   : > { %2383 = vst.msk [vmem:[%s4057_s17 + $0x38] sm:$0xff] %vm717_vm2, %v2367_v51 }
 0x3a9   : > { %v2272_v36 = vpop.f32.mrf.mxu3 }
 0x3aa   : > { %v2273_v29 = vadd.f32 %v2272_v36, %v2224_v43 }
 0x3ac   : > { %v2322_v4 = vadd.f32 %v2321_v23, %v2273_v29  ;;  %v2336_v32 = vpop.f32.mrf.mxu2 }
 0x3ae   : > { %v2368_v21 = vadd.f32 %v2691_v30, %v2322_v4 }
 0x3b0   : > { %2384 = vst.msk [vmem:[%s4057_s17 + $0x40] sm:$0xff] %vm717_vm2, %v2368_v21 }
 0x3b1   : > { %v2274_v44 = vpop.f32.mrf.mxu3 }
 0x3b2   : > { %v2275_v47 = vadd.f32 %v2274_v44, %v2226_v55 }
 0x3b4   : > { %v2324_v63 = vadd.f32 %v2323_v46, %v2275_v47  ;;  %v2338_v41 = vpop.f32.mrf.mxu2 }
 0x3b6   : > { %v2369_v40 = vadd.f32 %v2692_v11, %v2324_v63 }
 0x3b8   : > { %2385 = vst.msk [vmem:[%s4057_s17 + $0x48] sm:$0xff] %vm717_vm2, %v2369_v40 }
 0x3b9   : > { %v2277_v19 = vpop.f32.mrf.mxu3 }
 0x3ba   : > { %v2278_v54 = vadd.f32 %v2277_v19, %v2229_v24 }
 0x3bc   : > { %v2327_v17 = vadd.f32 %v2326_v48, %v2278_v54 }
 0x3be   : > { %v2370_v39 = vadd.f32 %v2693_v22, %v2327_v17 }
 0x3c0   : > { %2386 = vst.msk [vmem:[%s4057_s17 + $0x50] sm:$0xff] %vm717_vm2, %v2370_v39 }
 0x3c1   : > { %v2279_v58 = vpop.f32.mrf.mxu3 }
 0x3c2   : > { %v2280_v38 = vadd.f32 %v2279_v58, %v2231_v52 }
 0x3c4   : > { %v2329_v57 = vadd.f32 %v2328_v45, %v2280_v38 }
 0x3c6   : > { %v2371_v0 = vadd.f32 %v2694_v28, %v2329_v57 }
 0x3c8   : > { %2387 = vst.msk [vmem:[%s4057_s17 + $0x58] sm:$0xff] %vm717_vm2, %v2371_v0 }
 0x3c9   : > { %v2282_v27 = vpop.f32.mrf.mxu3 }
 0x3ca   : > { %v2283_v1 = vadd.f32 %v2282_v27, %v2234_v10 }
 0x3cc   : > { %v2332_v31 = vadd.f32 %v2331_v61, %v2283_v1 }
 0x3ce   : > { %v2372_v53 = vadd.f32 %v2695_v62, %v2332_v31 }
 0x3d0   : > { %2388 = vst.msk [vmem:[%s4057_s17 + $0x60] sm:$0xff] %vm717_vm2, %v2372_v53 }
 0x3d1   : > { %v2284_v50 = vpop.f32.mrf.mxu3 }
 0x3d2   : > { %v2285_v20 = vadd.f32 %v2284_v50, %v2236_v25 }
 0x3d4   : > { %v2334_v56 = vadd.f32 %v2333_v2, %v2285_v20 }
 0x3d6   : > { %v2373_v8 = vadd.f32 %v2696_v9, %v2334_v56 }
 0x3d8   : > { %2389 = vst.msk [vmem:[%s4057_s17 + $0x68] sm:$0xff] %vm717_vm2, %v2373_v8 }
 0x3d9   : > { %v2287_v16 = vpop.f32.mrf.mxu3 }
 0x3da   : > { %v2288_v35 = vadd.f32 %v2287_v16, %v2239_v3 }
 0x3dc   : > { %v2337_v42 = vadd.f32 %v2336_v32, %v2288_v35 }
 0x3de   : > { %v2374_v14 = vadd.f32 %v2697_v60, %v2337_v42 }
 0x3e0   : > { %2390 = vst.msk [vmem:[%s4057_s17 + $0x70] sm:$0xff] %vm717_vm2, %v2374_v14 }
 0x3e1   : > { %v2289_v33 = vpop.f32.mrf.mxu3 }
 0x3e2   : > { %v2290_v18 = vadd.f32 %v2289_v33, %v2241_v13 }
 0x3e4   : > { %v2339_v12 = vadd.f32 %v2338_v41, %v2290_v18 }
 0x3e6   : > { %v2375_v23 = vadd.f32 %v2698_v59, %v2339_v12 }
 0x3e8   : > { %2391 = vst.msk [vmem:[%s4057_s17 + $0x78] sm:$0xff] %vm717_vm2, %v2375_v23 }
 0x3e9   : > { %2911 = shalt.err (!%p2908_p11)
}
 0x3ea   : > { %s2983_s26 = smov 128   ;;  %s2984_s17 = smov 8  }
 0x3eb   : > { %2806 = dma.vmem_to_hbm [thread:$0]  (%p3066_p3), %s2409_s8, 2048, %s2411_s14, %s2393_s13, %s2983_s26, %s2983_s26, %s2984_s17  }
 0x3ec PF: > { %p2812_p12 = scmp.ge.s32.totalorder %s2978_s25, 2  ;;  %s2425_s15 = sand.u32 1, %s2950_s18  }
 0x3ed   : > { %s2426_s2 = scalar_lea.sflag [#allocation4], %s2425_s15 }
 0x3ee   : > { %p2809_p13 = pnand %p2812_p12, %p3075_p8 }
 0x3f0   : > { %p2810_p0 = pneg %p2809_p13 }
 0x3f2   : > { %2945 = dma.done.wait (%p2810_p0), %s2426_s2, 2048  }
 0x3f3   : > { %2947 = vsyncadd (%p2810_p0), %s2426_s2, 4294965248  ;;  %s18_s25 = sadd.s32 1, %s2978_s25   ;;  %s4200_s18 = smov %s2954_s19 }
 0x3f4   : > { %p15_p1 = scmp.ge.s32.totalorder %s18_s25, 6   ;;  %s4201_s19 = smov %s2958_s20 }
 0x3f5   : > { %s4202_s20 = smov %s3084_s11  ;;  %s4203_s21 = smov %s2970_s23 }
 0x3f6   : > { %s4204_s22 = smov %s2974_s24  ;;  %s4205_s23 = smov %s4208_s28 }
 0x3f7   : > { %s4206_s24 = smov %s4212_s29  ;;  %17 = sbr.rel (!%p15_p1) target bundleno = 9 (0x9), region = 80 }
 0x3fc   :  { %2432 = vsyncpa [#allocation4], 1 }
 0x3fd   :  { %2434 = vsyncpa [#allocation4 + $0x1], 1 }

</bundles_post_ra>
